<compile_context>
chip_gen: v6e
topology: v6e:2x2x1
jax: 0.10.0
libtpu: 0.0.40
codegen_flags: <defaults>
</compile_context>

<pallas_src>
import jax
import jax.numpy as jnp
from jax.experimental import pallas as pl
from jax.experimental.pallas import tpu as pltpu  # noqa: F401  (kept for parity)

HIDDEN = 64
NUM_LAYERS = 2
NUM_CLASSES = 5
C1 = 16   # conv1 output channels
C2 = 32   # conv2 output channels
P = 8     # batch padded to one sublane tile


# ------------------------------ fused kernel --------------------------------

def fused_forward_kernel(x_ref, w1_ref, b1_ref, w2_ref, b2_ref,
                         wih0_ref, whh0_ref, bl0_ref,
                         wih1_ref, whh1_ref, bl1_ref,
                         wfc_ref, bfc_ref, o_ref):
    B = x_ref.shape[0]            # true batch (<= P)
    L = x_ref.shape[1]            # conv1 input length
    CIN = x_ref.shape[2]
    L2 = L // 2                   # length after first pool
    T = L // 4                    # LSTM sequence length
    H = HIDDEN
    f32, bf16 = jnp.float32, jnp.bfloat16

    # ---- stage input in-kernel: (B, L, CIN) -> length-major rows (l, b),
    #      batch padded to 8 sublanes, zero length-padding rows at both ends.
    #      Built with iota + select (no transpose / sublane-concat lowering).
    bsel = jax.lax.broadcasted_iota(jnp.int32, (L, P, CIN), 1)
    xt = jnp.zeros((L, P, CIN), f32)
    for b in range(B):                               # B is tiny & static
        xt = jnp.where(bsel == b, x_ref[b][:, None, :], xt)
    zrow = jnp.zeros((1, P, CIN), f32)
    xpad = jnp.concatenate([zrow, xt, zrow], axis=0)            # (L+2, P, CIN)
    xpad = xpad.reshape((L + 2) * P, CIN).astype(bf16)

    def conv_pool(src, w_ref, b_ref, n):
        """Conv1d(k=3, pad already in src) + MaxPool1d(2).

        src: ((n+2)*P, Cin) bf16, flat length-major rows (l, b); rows 0..P-1
             and the last P rows are the zero padding.
        w_ref: (3, Cin, Cout) bf16 (tap-major);  b_ref: (1, Cout) f32
        returns (n//2, P, Cout) f32
        """
        cout = w_ref.shape[2]
        # one matmul per tap over ALL (length, batch) rows; f32 accumulation
        acc = jnp.dot(src[0:n * P], w_ref[0], preferred_element_type=f32)
        acc = acc + jnp.dot(src[P:(n + 1) * P], w_ref[1],
                            preferred_element_type=f32)
        acc = acc + jnp.dot(src[2 * P:(n + 2) * P], w_ref[2],
                            preferred_element_type=f32)
        acc = acc + b_ref[...]                                  # bias once
        # MaxPool1d(2): max over adjacent length positions (sublane-aligned)
        a = acc.reshape(n // 2, 2 * P, cout)
        return jnp.maximum(a[:, 0:P, :], a[:, P:2 * P, :])

    # Conv1d(3 -> 16, k=3, pad=1) + MaxPool1d(2)
    p1 = conv_pool(xpad, w1_ref, b1_ref, L)                     # (L2, P, 16) f32
    z1 = jnp.zeros((1, P, C1), f32)
    p1p = (jnp.concatenate([z1, p1, z1], axis=0)
           .reshape((L2 + 2) * P, C1).astype(bf16))

    # Conv1d(16 -> 32, k=3, pad=1) + MaxPool1d(2); output already time-major
    p2 = conv_pool(p1p, w2_ref, b2_ref, L2)                     # (T, P, 32) f32
    x_lstm = p2.reshape(T * P, C2).astype(bf16)

    # ---- 2-layer LSTM, PyTorch gate order [i, f, g, o], zero initial state.
    lane = jax.lax.broadcasted_iota(jnp.int32, (1, 4 * H), 1)
    g_mask = (lane >= 2 * H) & (lane < 3 * H)       # tanh lanes (gate g)

    def cell(gates, c_prev):
        # full-vreg tanh + sigmoid blended by a static lane mask (EUP has slack)
        acts = jnp.where(g_mask, jnp.tanh(gates), jax.nn.sigmoid(gates))
        i = acts[:, 0 * H:1 * H]
        f = acts[:, 1 * H:2 * H]
        g = acts[:, 2 * H:3 * H]
        o = acts[:, 3 * H:4 * H]
        c = f * c_prev + i * g
        h = o * jnp.tanh(c)
        return h, c

    # Layer-0 input projection hoisted off the recurrence: one (T*P, 32)@(32, 4H)
    gx0 = jnp.dot(x_lstm, wih0_ref[...], preferred_element_type=f32) + bl0_ref[...]

    h0 = jnp.zeros((P, H), f32); c0 = jnp.zeros((P, H), f32)
    h1 = jnp.zeros((P, H), f32); c1 = jnp.zeros((P, H), f32)

    # Wavefront interleave: step s runs layer-0 time s and layer-1 time s-1,
    # two independent chains the scheduler can overlap.  T is small & static.
    for s in range(T + 1):
        h0_in_bf = h0.astype(bf16)   # h0[s-1]: layer-0 recurrent in AND layer-1 input
        if s >= 1:                   # layer 1, time step s-1
            gates1 = (jnp.dot(h0_in_bf, wih1_ref[...], preferred_element_type=f32)
                      + jnp.dot(h1.astype(bf16), whh1_ref[...],
                                preferred_element_type=f32)
                      + bl1_ref[...])
            h1, c1 = cell(gates1, c1)
        if s < T:                    # layer 0, time step s
            gates0 = gx0[s * P:(s + 1) * P, :] + jnp.dot(
                h0_in_bf, whh0_ref[...], preferred_element_type=f32)
            h0, c0 = cell(gates0, c0)

    # Linear(64 -> 5) on the last hidden state of layer 1 (bf16 MXU, f32 acc)
    logits = jnp.dot(h1.astype(bf16), wfc_ref[...],
                     preferred_element_type=f32) + bfc_ref[...]
    o_ref[...] = logits[0:B, :]


# ------------------------------ JAX wrapper ---------------------------------

@jax.jit
def lstm_model_forward(x, params):
    """x: (B, L, 3) float32 -- the tensor PyTorch receives before transpose(1,2)."""
    B, L, _ = x.shape
    assert L % 4 == 0, "sequence length must be divisible by 4 (two MaxPool1d(2))"
    assert B <= P
    return pl.pallas_call(
        fused_forward_kernel,
        out_shape=jax.ShapeDtypeStruct((B, NUM_CLASSES), jnp.float32),
    )(x,
      params['w1'], params['b1'],
      params['w2'], params['b2'],
      params['wih0'], params['whh0'], params['bl0'],
      params['wih1'], params['whh1'], params['bl1'],
      params['wfc'], params['bfc'])


def init_params(key):
    """Deterministic init mimicking PyTorch's U(-1/sqrt(fan), 1/sqrt(fan))."""
    ks = jax.random.split(key, 14)

    def u(k, shape, fan):
        bound = 1.0 / (fan ** 0.5)
        return jax.random.uniform(k, shape, jnp.float32, -bound, bound)

    H = HIDDEN
    p = {}
    # Conv1d(3, 16, 3): weight stored as (K, Cin, Cout)
    p['w1'] = u(ks[0], (3, 3, C1), 3 * 3)
    p['b1'] = u(ks[1], (1, C1), 3 * 3)
    # Conv1d(16, 32, 3)
    p['w2'] = u(ks[2], (3, C1, C2), C1 * 3)
    p['b2'] = u(ks[3], (1, C2), C1 * 3)
    # LSTM layer 0 (input 32 -> hidden 64); weights stored transposed (In, 4H)
    p['wih0'] = u(ks[4], (C2, 4 * H), H)
    p['whh0'] = u(ks[5], (H, 4 * H), H)
    p['bl0'] = u(ks[6], (1, 4 * H), H) + u(ks[7], (1, 4 * H), H)   # b_ih + b_hh
    # LSTM layer 1 (input 64 -> hidden 64)
    p['wih1'] = u(ks[8], (H, 4 * H), H)
    p['whh1'] = u(ks[9], (H, 4 * H), H)
    p['bl1'] = u(ks[10], (1, 4 * H), H) + u(ks[11], (1, 4 * H), H)
    # Linear(64 -> 5)
    p['wfc'] = u(ks[12], (H, NUM_CLASSES), H)
    p['bfc'] = u(ks[13], (1, NUM_CLASSES), H)
    return p


def prepare_params(p):
    """One-time host-side prep (outside jit): bf16 copies of every matmul
    operand; biases stay f32 (added after f32 MXU accumulation)."""
    out = dict(p)
    for name in ('w1', 'w2', 'wih0', 'whh0', 'wih1', 'whh1', 'wfc'):
        out[name] = p[name].astype(jnp.bfloat16)
    return out


if __name__ == "__main__":
    key = jax.random.PRNGKey(0)
    pkey, xkey = jax.random.split(key)
    params = prepare_params(init_params(pkey))
    # batch=2, seq_len=16, features=3  ->  LSTM sees T = 16/4 = 4 steps
    x = jax.random.normal(xkey, (2, 16, 3), jnp.float32)
    out = lstm_model_forward(x, params)
    out = jax.block_until_ready(out)
    assert out.shape == (2, NUM_CLASSES), out.shape
    assert bool(jnp.all(jnp.isfinite(out)))
    print("KERNEL_OK")
</pallas_src>

<mosaic_0001>
module attributes {stable_mosaic.version = 11 : i64} {
  func.func @fused_forward_kernel(%arg0: memref<2x16x3xf32, #tpu.memory_space<vmem>>, %arg1: memref<3x3x16xbf16, #tpu.memory_space<vmem>>, %arg2: memref<1x16xf32, #tpu.memory_space<vmem>>, %arg3: memref<3x16x32xbf16, #tpu.memory_space<vmem>>, %arg4: memref<1x32xf32, #tpu.memory_space<vmem>>, %arg5: memref<32x256xbf16, #tpu.memory_space<vmem>>, %arg6: memref<64x256xbf16, #tpu.memory_space<vmem>>, %arg7: memref<1x256xf32, #tpu.memory_space<vmem>>, %arg8: memref<64x256xbf16, #tpu.memory_space<vmem>>, %arg9: memref<64x256xbf16, #tpu.memory_space<vmem>>, %arg10: memref<1x256xf32, #tpu.memory_space<vmem>>, %arg11: memref<64x5xbf16, #tpu.memory_space<vmem>>, %arg12: memref<1x5xf32, #tpu.memory_space<vmem>>, %arg13: memref<2x5xf32, #tpu.memory_space<vmem>>) attributes {dimension_semantics = [], scalar_prefetch = 0 : i64, scratch_operands = 0 : i64, tpu.core_type = #tpu.core_type<tc>} {
    %0 = tpu.iota {dimensions = array<i32: 1>} : vector<16x8x3xi32>
    %cst = arith.constant 0.000000e+00 : f32
    %1 = vector.broadcast %cst : f32 to vector<16x8x3xf32>
    %c0_i32 = arith.constant 0 : i32
    %2 = vector.broadcast %c0_i32 : i32 to vector<16x8x3xi32>
    %3 = arith.cmpi eq, %0, %2 : vector<16x8x3xi32>
    %c0 = arith.constant 0 : index
    %c0_0 = arith.constant 0 : index
    %c0_1 = arith.constant 0 : index
    %4 = vector.load %arg0[%c0, %c0_0, %c0_1] : memref<2x16x3xf32, #tpu.memory_space<vmem>>, vector<1x16x3xf32>
    %5 = vector.shape_cast %4 : vector<1x16x3xf32> to vector<16x3xf32>
    %6 = vector.shape_cast %5 : vector<16x3xf32> to vector<16x1x3xf32>
    %7 = vector.shape_cast %6 : vector<16x1x3xf32> to vector<16x1x3xf32>
    %8 = vector.broadcast %7 : vector<16x1x3xf32> to vector<16x8x3xf32>
    %9 = arith.select %3, %8, %1 : vector<16x8x3xi1>, vector<16x8x3xf32>
    %c1_i32 = arith.constant 1 : i32
    %10 = vector.broadcast %c1_i32 : i32 to vector<16x8x3xi32>
    %11 = arith.cmpi eq, %0, %10 : vector<16x8x3xi32>
    %c1 = arith.constant 1 : index
    %c0_2 = arith.constant 0 : index
    %c0_3 = arith.constant 0 : index
    %12 = vector.load %arg0[%c1, %c0_2, %c0_3] : memref<2x16x3xf32, #tpu.memory_space<vmem>>, vector<1x16x3xf32>
    %13 = vector.shape_cast %12 : vector<1x16x3xf32> to vector<16x3xf32>
    %14 = vector.shape_cast %13 : vector<16x3xf32> to vector<16x1x3xf32>
    %15 = vector.shape_cast %14 : vector<16x1x3xf32> to vector<16x1x3xf32>
    %16 = vector.broadcast %15 : vector<16x1x3xf32> to vector<16x8x3xf32>
    %17 = arith.select %11, %16, %9 : vector<16x8x3xi1>, vector<16x8x3xf32>
    %cst_4 = arith.constant 0.000000e+00 : f32
    %18 = vector.broadcast %cst_4 : f32 to vector<1x8x3xf32>
    %19 = tpu.concatenate %18, %17, %18 in 0 : vector<1x8x3xf32>, vector<16x8x3xf32>, vector<1x8x3xf32> -> vector<18x8x3xf32>
    %20 = vector.shape_cast %19 : vector<18x8x3xf32> to vector<144x3xf32>
    %21 = arith.truncf %20 : vector<144x3xf32> to vector<144x3xbf16>
    %22 = vector.extract_strided_slice %21 {offsets = [0, 0], sizes = [128, 3], strides = [1, 1]} : vector<144x3xbf16> to vector<128x3xbf16>
    %c0_5 = arith.constant 0 : index
    %c0_6 = arith.constant 0 : index
    %c0_7 = arith.constant 0 : index
    %23 = vector.load %arg1[%c0_5, %c0_6, %c0_7] : memref<3x3x16xbf16, #tpu.memory_space<vmem>>, vector<1x3x16xbf16>
    %24 = vector.shape_cast %23 : vector<1x3x16xbf16> to vector<3x16xbf16>
    %cst_8 = arith.constant dense<0.000000e+00> : vector<128x16xf32>
    %25 = tpu.matmul %22, %24, %cst_8 {dimension_numbers = #tpu.dot_dimension_numbers<[1], [0], [0], [1], [0, 0, 1, 1], [], []>} : vector<128x3xbf16>, vector<3x16xbf16>, vector<128x16xf32> -> vector<128x16xf32>
    %26 = vector.extract_strided_slice %21 {offsets = [8, 0], sizes = [128, 3], strides = [1, 1]} : vector<144x3xbf16> to vector<128x3xbf16>
    %c1_9 = arith.constant 1 : index
    %c0_10 = arith.constant 0 : index
    %c0_11 = arith.constant 0 : index
    %27 = vector.load %arg1[%c1_9, %c0_10, %c0_11] : memref<3x3x16xbf16, #tpu.memory_space<vmem>>, vector<1x3x16xbf16>
    %28 = vector.shape_cast %27 : vector<1x3x16xbf16> to vector<3x16xbf16>
    %cst_12 = arith.constant dense<0.000000e+00> : vector<128x16xf32>
    %29 = tpu.matmul %26, %28, %cst_12 {dimension_numbers = #tpu.dot_dimension_numbers<[1], [0], [0], [1], [0, 0, 1, 1], [], []>} : vector<128x3xbf16>, vector<3x16xbf16>, vector<128x16xf32> -> vector<128x16xf32>
    %30 = arith.addf %25, %29 : vector<128x16xf32>
    %31 = vector.extract_strided_slice %21 {offsets = [16, 0], sizes = [128, 3], strides = [1, 1]} : vector<144x3xbf16> to vector<128x3xbf16>
    %c2 = arith.constant 2 : index
    %c0_13 = arith.constant 0 : index
    %c0_14 = arith.constant 0 : index
    %32 = vector.load %arg1[%c2, %c0_13, %c0_14] : memref<3x3x16xbf16, #tpu.memory_space<vmem>>, vector<1x3x16xbf16>
    %33 = vector.shape_cast %32 : vector<1x3x16xbf16> to vector<3x16xbf16>
    %cst_15 = arith.constant dense<0.000000e+00> : vector<128x16xf32>
    %34 = tpu.matmul %31, %33, %cst_15 {dimension_numbers = #tpu.dot_dimension_numbers<[1], [0], [0], [1], [0, 0, 1, 1], [], []>} : vector<128x3xbf16>, vector<3x16xbf16>, vector<128x16xf32> -> vector<128x16xf32>
    %35 = arith.addf %30, %34 : vector<128x16xf32>
    %c0_16 = arith.constant 0 : index
    %c0_17 = arith.constant 0 : index
    %36 = vector.load %arg2[%c0_16, %c0_17] : memref<1x16xf32, #tpu.memory_space<vmem>>, vector<1x16xf32>
    %37 = vector.broadcast %36 : vector<1x16xf32> to vector<128x16xf32>
    %38 = arith.addf %35, %37 : vector<128x16xf32>
    %39 = vector.shape_cast %38 : vector<128x16xf32> to vector<8x16x16xf32>
    %40 = vector.extract_strided_slice %39 {offsets = [0, 0, 0], sizes = [8, 8, 16], strides = [1, 1, 1]} : vector<8x16x16xf32> to vector<8x8x16xf32>
    %41 = vector.extract_strided_slice %39 {offsets = [0, 8, 0], sizes = [8, 8, 16], strides = [1, 1, 1]} : vector<8x16x16xf32> to vector<8x8x16xf32>
    %42 = arith.maximumf %40, %41 : vector<8x8x16xf32>
    %cst_18 = arith.constant 0.000000e+00 : f32
    %43 = vector.broadcast %cst_18 : f32 to vector<1x8x16xf32>
    %44 = tpu.concatenate %43, %42, %43 in 0 : vector<1x8x16xf32>, vector<8x8x16xf32>, vector<1x8x16xf32> -> vector<10x8x16xf32>
    %45 = vector.shape_cast %44 : vector<10x8x16xf32> to vector<80x16xf32>
    %46 = arith.truncf %45 : vector<80x16xf32> to vector<80x16xbf16>
    %47 = vector.extract_strided_slice %46 {offsets = [0, 0], sizes = [64, 16], strides = [1, 1]} : vector<80x16xbf16> to vector<64x16xbf16>
    %c0_19 = arith.constant 0 : index
    %c0_20 = arith.constant 0 : index
    %c0_21 = arith.constant 0 : index
    %48 = vector.load %arg3[%c0_19, %c0_20, %c0_21] : memref<3x16x32xbf16, #tpu.memory_space<vmem>>, vector<1x16x32xbf16>
    %49 = vector.shape_cast %48 : vector<1x16x32xbf16> to vector<16x32xbf16>
    %cst_22 = arith.constant dense<0.000000e+00> : vector<64x32xf32>
    %50 = tpu.matmul %47, %49, %cst_22 {dimension_numbers = #tpu.dot_dimension_numbers<[1], [0], [0], [1], [0, 0, 1, 1], [], []>} : vector<64x16xbf16>, vector<16x32xbf16>, vector<64x32xf32> -> vector<64x32xf32>
    %51 = vector.extract_strided_slice %46 {offsets = [8, 0], sizes = [64, 16], strides = [1, 1]} : vector<80x16xbf16> to vector<64x16xbf16>
    %c1_23 = arith.constant 1 : index
    %c0_24 = arith.constant 0 : index
    %c0_25 = arith.constant 0 : index
    %52 = vector.load %arg3[%c1_23, %c0_24, %c0_25] : memref<3x16x32xbf16, #tpu.memory_space<vmem>>, vector<1x16x32xbf16>
    %53 = vector.shape_cast %52 : vector<1x16x32xbf16> to vector<16x32xbf16>
    %cst_26 = arith.constant dense<0.000000e+00> : vector<64x32xf32>
    %54 = tpu.matmul %51, %53, %cst_26 {dimension_numbers = #tpu.dot_dimension_numbers<[1], [0], [0], [1], [0, 0, 1, 1], [], []>} : vector<64x16xbf16>, vector<16x32xbf16>, vector<64x32xf32> -> vector<64x32xf32>
    %55 = arith.addf %50, %54 : vector<64x32xf32>
    %56 = vector.extract_strided_slice %46 {offsets = [16, 0], sizes = [64, 16], strides = [1, 1]} : vector<80x16xbf16> to vector<64x16xbf16>
    %c2_27 = arith.constant 2 : index
    %c0_28 = arith.constant 0 : index
    %c0_29 = arith.constant 0 : index
    %57 = vector.load %arg3[%c2_27, %c0_28, %c0_29] : memref<3x16x32xbf16, #tpu.memory_space<vmem>>, vector<1x16x32xbf16>
    %58 = vector.shape_cast %57 : vector<1x16x32xbf16> to vector<16x32xbf16>
    %cst_30 = arith.constant dense<0.000000e+00> : vector<64x32xf32>
    %59 = tpu.matmul %56, %58, %cst_30 {dimension_numbers = #tpu.dot_dimension_numbers<[1], [0], [0], [1], [0, 0, 1, 1], [], []>} : vector<64x16xbf16>, vector<16x32xbf16>, vector<64x32xf32> -> vector<64x32xf32>
    %60 = arith.addf %55, %59 : vector<64x32xf32>
    %c0_31 = arith.constant 0 : index
    %c0_32 = arith.constant 0 : index
    %61 = vector.load %arg4[%c0_31, %c0_32] : memref<1x32xf32, #tpu.memory_space<vmem>>, vector<1x32xf32>
    %62 = vector.broadcast %61 : vector<1x32xf32> to vector<64x32xf32>
    %63 = arith.addf %60, %62 : vector<64x32xf32>
    %64 = vector.shape_cast %63 : vector<64x32xf32> to vector<4x16x32xf32>
    %65 = vector.extract_strided_slice %64 {offsets = [0, 0, 0], sizes = [4, 8, 32], strides = [1, 1, 1]} : vector<4x16x32xf32> to vector<4x8x32xf32>
    %66 = vector.extract_strided_slice %64 {offsets = [0, 8, 0], sizes = [4, 8, 32], strides = [1, 1, 1]} : vector<4x16x32xf32> to vector<4x8x32xf32>
    %67 = arith.maximumf %65, %66 : vector<4x8x32xf32>
    %68 = vector.shape_cast %67 : vector<4x8x32xf32> to vector<32x32xf32>
    %69 = arith.truncf %68 : vector<32x32xf32> to vector<32x32xbf16>
    %70 = tpu.iota {dimensions = array<i32: 1>} : vector<1x256xi32>
    %c128_i32 = arith.constant 128 : i32
    %71 = vector.broadcast %c128_i32 : i32 to vector<1x256xi32>
    %72 = arith.cmpi sge, %70, %71 : vector<1x256xi32>
    %c192_i32 = arith.constant 192 : i32
    %73 = vector.broadcast %c192_i32 : i32 to vector<1x256xi32>
    %74 = arith.cmpi slt, %70, %73 : vector<1x256xi32>
    %75 = arith.andi %72, %74 : vector<1x256xi1>
    %c0_33 = arith.constant 0 : index
    %c0_34 = arith.constant 0 : index
    %76 = vector.load %arg5[%c0_33, %c0_34] : memref<32x256xbf16, #tpu.memory_space<vmem>>, vector<32x256xbf16>
    %cst_35 = arith.constant dense<0.000000e+00> : vector<32x256xf32>
    %77 = tpu.matmul %69, %76, %cst_35 {dimension_numbers = #tpu.dot_dimension_numbers<[1], [0], [0], [1], [0, 0, 1, 1], [], []>} : vector<32x32xbf16>, vector<32x256xbf16>, vector<32x256xf32> -> vector<32x256xf32>
    %c0_36 = arith.constant 0 : index
    %c0_37 = arith.constant 0 : index
    %78 = vector.load %arg7[%c0_36, %c0_37] : memref<1x256xf32, #tpu.memory_space<vmem>>, vector<1x256xf32>
    %79 = vector.broadcast %78 : vector<1x256xf32> to vector<32x256xf32>
    %80 = arith.addf %77, %79 : vector<32x256xf32>
    %cst_38 = arith.constant 0.000000e+00 : f32
    %81 = vector.broadcast %cst_38 : f32 to vector<8x64xf32>
    %cst_39 = arith.constant 0.000000e+00 : f32
    %82 = vector.broadcast %cst_39 : f32 to vector<8x64xf32>
    %cst_40 = arith.constant 0.000000e+00 : f32
    %83 = vector.broadcast %cst_40 : f32 to vector<8x64xf32>
    %cst_41 = arith.constant 0.000000e+00 : f32
    %84 = vector.broadcast %cst_41 : f32 to vector<8x64xf32>
    %85 = arith.truncf %81 : vector<8x64xf32> to vector<8x64xbf16>
    %86 = vector.extract_strided_slice %80 {offsets = [0, 0], sizes = [8, 256], strides = [1, 1]} : vector<32x256xf32> to vector<8x256xf32>
    %c0_42 = arith.constant 0 : index
    %c0_43 = arith.constant 0 : index
    %87 = vector.load %arg6[%c0_42, %c0_43] : memref<64x256xbf16, #tpu.memory_space<vmem>>, vector<64x256xbf16>
    %cst_44 = arith.constant dense<0.000000e+00> : vector<8x256xf32>
    %88 = tpu.matmul %85, %87, %cst_44 {dimension_numbers = #tpu.dot_dimension_numbers<[1], [0], [0], [1], [0, 0, 1, 1], [], []>} : vector<8x64xbf16>, vector<64x256xbf16>, vector<8x256xf32> -> vector<8x256xf32>
    %89 = arith.addf %86, %88 : vector<8x256xf32>
    %90 = math.tanh %89 : vector<8x256xf32>
    %91 = arith.negf %89 : vector<8x256xf32>
    %92 = math.exp %91 : vector<8x256xf32>
    %cst_45 = arith.constant 1.000000e+00 : f32
    %93 = vector.broadcast %cst_45 : f32 to vector<8x256xf32>
    %94 = arith.addf %93, %92 : vector<8x256xf32>
    %95 = arith.divf %93, %94 : vector<8x256xf32>
    %96 = vector.shape_cast %75 : vector<1x256xi1> to vector<1x256xi1>
    %97 = vector.broadcast %96 : vector<1x256xi1> to vector<8x256xi1>
    %98 = arith.select %97, %90, %95 : vector<8x256xi1>, vector<8x256xf32>
    %99 = vector.extract_strided_slice %98 {offsets = [0, 0], sizes = [8, 64], strides = [1, 1]} : vector<8x256xf32> to vector<8x64xf32>
    %100 = vector.extract_strided_slice %98 {offsets = [0, 64], sizes = [8, 64], strides = [1, 1]} : vector<8x256xf32> to vector<8x64xf32>
    %101 = vector.extract_strided_slice %98 {offsets = [0, 128], sizes = [8, 64], strides = [1, 1]} : vector<8x256xf32> to vector<8x64xf32>
    %102 = vector.extract_strided_slice %98 {offsets = [0, 192], sizes = [8, 64], strides = [1, 1]} : vector<8x256xf32> to vector<8x64xf32>
    %103 = arith.mulf %100, %82 : vector<8x64xf32>
    %104 = arith.mulf %99, %101 : vector<8x64xf32>
    %105 = arith.addf %103, %104 : vector<8x64xf32>
    %106 = math.tanh %105 : vector<8x64xf32>
    %107 = arith.mulf %102, %106 : vector<8x64xf32>
    %108 = arith.truncf %107 : vector<8x64xf32> to vector<8x64xbf16>
    %c0_46 = arith.constant 0 : index
    %c0_47 = arith.constant 0 : index
    %109 = vector.load %arg8[%c0_46, %c0_47] : memref<64x256xbf16, #tpu.memory_space<vmem>>, vector<64x256xbf16>
    %cst_48 = arith.constant dense<0.000000e+00> : vector<8x256xf32>
    %110 = tpu.matmul %108, %109, %cst_48 {dimension_numbers = #tpu.dot_dimension_numbers<[1], [0], [0], [1], [0, 0, 1, 1], [], []>} : vector<8x64xbf16>, vector<64x256xbf16>, vector<8x256xf32> -> vector<8x256xf32>
    %111 = arith.truncf %83 : vector<8x64xf32> to vector<8x64xbf16>
    %c0_49 = arith.constant 0 : index
    %c0_50 = arith.constant 0 : index
    %112 = vector.load %arg9[%c0_49, %c0_50] : memref<64x256xbf16, #tpu.memory_space<vmem>>, vector<64x256xbf16>
    %cst_51 = arith.constant dense<0.000000e+00> : vector<8x256xf32>
    %113 = tpu.matmul %111, %112, %cst_51 {dimension_numbers = #tpu.dot_dimension_numbers<[1], [0], [0], [1], [0, 0, 1, 1], [], []>} : vector<8x64xbf16>, vector<64x256xbf16>, vector<8x256xf32> -> vector<8x256xf32>
    %114 = arith.addf %110, %113 : vector<8x256xf32>
    %c0_52 = arith.constant 0 : index
    %c0_53 = arith.constant 0 : index
    %115 = vector.load %arg10[%c0_52, %c0_53] : memref<1x256xf32, #tpu.memory_space<vmem>>, vector<1x256xf32>
    %116 = vector.broadcast %115 : vector<1x256xf32> to vector<8x256xf32>
    %117 = arith.addf %114, %116 : vector<8x256xf32>
    %118 = math.tanh %117 : vector<8x256xf32>
    %119 = arith.negf %117 : vector<8x256xf32>
    %120 = math.exp %119 : vector<8x256xf32>
    %cst_54 = arith.constant 1.000000e+00 : f32
    %121 = vector.broadcast %cst_54 : f32 to vector<8x256xf32>
    %122 = arith.addf %121, %120 : vector<8x256xf32>
    %123 = arith.divf %121, %122 : vector<8x256xf32>
    %124 = vector.shape_cast %75 : vector<1x256xi1> to vector<1x256xi1>
    %125 = vector.broadcast %124 : vector<1x256xi1> to vector<8x256xi1>
    %126 = arith.select %125, %118, %123 : vector<8x256xi1>, vector<8x256xf32>
    %127 = vector.extract_strided_slice %126 {offsets = [0, 0], sizes = [8, 64], strides = [1, 1]} : vector<8x256xf32> to vector<8x64xf32>
    %128 = vector.extract_strided_slice %126 {offsets = [0, 64], sizes = [8, 64], strides = [1, 1]} : vector<8x256xf32> to vector<8x64xf32>
    %129 = vector.extract_strided_slice %126 {offsets = [0, 128], sizes = [8, 64], strides = [1, 1]} : vector<8x256xf32> to vector<8x64xf32>
    %130 = vector.extract_strided_slice %126 {offsets = [0, 192], sizes = [8, 64], strides = [1, 1]} : vector<8x256xf32> to vector<8x64xf32>
    %131 = arith.mulf %128, %84 : vector<8x64xf32>
    %132 = arith.mulf %127, %129 : vector<8x64xf32>
    %133 = arith.addf %131, %132 : vector<8x64xf32>
    %134 = math.tanh %133 : vector<8x64xf32>
    %135 = arith.mulf %130, %134 : vector<8x64xf32>
    %136 = vector.extract_strided_slice %80 {offsets = [8, 0], sizes = [8, 256], strides = [1, 1]} : vector<32x256xf32> to vector<8x256xf32>
    %c0_55 = arith.constant 0 : index
    %c0_56 = arith.constant 0 : index
    %137 = vector.load %arg6[%c0_55, %c0_56] : memref<64x256xbf16, #tpu.memory_space<vmem>>, vector<64x256xbf16>
    %cst_57 = arith.constant dense<0.000000e+00> : vector<8x256xf32>
    %138 = tpu.matmul %108, %137, %cst_57 {dimension_numbers = #tpu.dot_dimension_numbers<[1], [0], [0], [1], [0, 0, 1, 1], [], []>} : vector<8x64xbf16>, vector<64x256xbf16>, vector<8x256xf32> -> vector<8x256xf32>
    %139 = arith.addf %136, %138 : vector<8x256xf32>
    %140 = math.tanh %139 : vector<8x256xf32>
    %141 = arith.negf %139 : vector<8x256xf32>
    %142 = math.exp %141 : vector<8x256xf32>
    %cst_58 = arith.constant 1.000000e+00 : f32
    %143 = vector.broadcast %cst_58 : f32 to vector<8x256xf32>
    %144 = arith.addf %143, %142 : vector<8x256xf32>
    %145 = arith.divf %143, %144 : vector<8x256xf32>
    %146 = vector.shape_cast %75 : vector<1x256xi1> to vector<1x256xi1>
    %147 = vector.broadcast %146 : vector<1x256xi1> to vector<8x256xi1>
    %148 = arith.select %147, %140, %145 : vector<8x256xi1>, vector<8x256xf32>
    %149 = vector.extract_strided_slice %148 {offsets = [0, 0], sizes = [8, 64], strides = [1, 1]} : vector<8x256xf32> to vector<8x64xf32>
    %150 = vector.extract_strided_slice %148 {offsets = [0, 64], sizes = [8, 64], strides = [1, 1]} : vector<8x256xf32> to vector<8x64xf32>
    %151 = vector.extract_strided_slice %148 {offsets = [0, 128], sizes = [8, 64], strides = [1, 1]} : vector<8x256xf32> to vector<8x64xf32>
    %152 = vector.extract_strided_slice %148 {offsets = [0, 192], sizes = [8, 64], strides = [1, 1]} : vector<8x256xf32> to vector<8x64xf32>
    %153 = arith.mulf %150, %105 : vector<8x64xf32>
    %154 = arith.mulf %149, %151 : vector<8x64xf32>
    %155 = arith.addf %153, %154 : vector<8x64xf32>
    %156 = math.tanh %155 : vector<8x64xf32>
    %157 = arith.mulf %152, %156 : vector<8x64xf32>
    %158 = arith.truncf %157 : vector<8x64xf32> to vector<8x64xbf16>
    %c0_59 = arith.constant 0 : index
    %c0_60 = arith.constant 0 : index
    %159 = vector.load %arg8[%c0_59, %c0_60] : memref<64x256xbf16, #tpu.memory_space<vmem>>, vector<64x256xbf16>
    %cst_61 = arith.constant dense<0.000000e+00> : vector<8x256xf32>
    %160 = tpu.matmul %158, %159, %cst_61 {dimension_numbers = #tpu.dot_dimension_numbers<[1], [0], [0], [1], [0, 0, 1, 1], [], []>} : vector<8x64xbf16>, vector<64x256xbf16>, vector<8x256xf32> -> vector<8x256xf32>
    %161 = arith.truncf %135 : vector<8x64xf32> to vector<8x64xbf16>
    %c0_62 = arith.constant 0 : index
    %c0_63 = arith.constant 0 : index
    %162 = vector.load %arg9[%c0_62, %c0_63] : memref<64x256xbf16, #tpu.memory_space<vmem>>, vector<64x256xbf16>
    %cst_64 = arith.constant dense<0.000000e+00> : vector<8x256xf32>
    %163 = tpu.matmul %161, %162, %cst_64 {dimension_numbers = #tpu.dot_dimension_numbers<[1], [0], [0], [1], [0, 0, 1, 1], [], []>} : vector<8x64xbf16>, vector<64x256xbf16>, vector<8x256xf32> -> vector<8x256xf32>
    %164 = arith.addf %160, %163 : vector<8x256xf32>
    %c0_65 = arith.constant 0 : index
    %c0_66 = arith.constant 0 : index
    %165 = vector.load %arg10[%c0_65, %c0_66] : memref<1x256xf32, #tpu.memory_space<vmem>>, vector<1x256xf32>
    %166 = vector.broadcast %165 : vector<1x256xf32> to vector<8x256xf32>
    %167 = arith.addf %164, %166 : vector<8x256xf32>
    %168 = math.tanh %167 : vector<8x256xf32>
    %169 = arith.negf %167 : vector<8x256xf32>
    %170 = math.exp %169 : vector<8x256xf32>
    %cst_67 = arith.constant 1.000000e+00 : f32
    %171 = vector.broadcast %cst_67 : f32 to vector<8x256xf32>
    %172 = arith.addf %171, %170 : vector<8x256xf32>
    %173 = arith.divf %171, %172 : vector<8x256xf32>
    %174 = vector.shape_cast %75 : vector<1x256xi1> to vector<1x256xi1>
    %175 = vector.broadcast %174 : vector<1x256xi1> to vector<8x256xi1>
    %176 = arith.select %175, %168, %173 : vector<8x256xi1>, vector<8x256xf32>
    %177 = vector.extract_strided_slice %176 {offsets = [0, 0], sizes = [8, 64], strides = [1, 1]} : vector<8x256xf32> to vector<8x64xf32>
    %178 = vector.extract_strided_slice %176 {offsets = [0, 64], sizes = [8, 64], strides = [1, 1]} : vector<8x256xf32> to vector<8x64xf32>
    %179 = vector.extract_strided_slice %176 {offsets = [0, 128], sizes = [8, 64], strides = [1, 1]} : vector<8x256xf32> to vector<8x64xf32>
    %180 = vector.extract_strided_slice %176 {offsets = [0, 192], sizes = [8, 64], strides = [1, 1]} : vector<8x256xf32> to vector<8x64xf32>
    %181 = arith.mulf %178, %133 : vector<8x64xf32>
    %182 = arith.mulf %177, %179 : vector<8x64xf32>
    %183 = arith.addf %181, %182 : vector<8x64xf32>
    %184 = math.tanh %183 : vector<8x64xf32>
    %185 = arith.mulf %180, %184 : vector<8x64xf32>
    %186 = vector.extract_strided_slice %80 {offsets = [16, 0], sizes = [8, 256], strides = [1, 1]} : vector<32x256xf32> to vector<8x256xf32>
    %c0_68 = arith.constant 0 : index
    %c0_69 = arith.constant 0 : index
    %187 = vector.load %arg6[%c0_68, %c0_69] : memref<64x256xbf16, #tpu.memory_space<vmem>>, vector<64x256xbf16>
    %cst_70 = arith.constant dense<0.000000e+00> : vector<8x256xf32>
    %188 = tpu.matmul %158, %187, %cst_70 {dimension_numbers = #tpu.dot_dimension_numbers<[1], [0], [0], [1], [0, 0, 1, 1], [], []>} : vector<8x64xbf16>, vector<64x256xbf16>, vector<8x256xf32> -> vector<8x256xf32>
    %189 = arith.addf %186, %188 : vector<8x256xf32>
    %190 = math.tanh %189 : vector<8x256xf32>
    %191 = arith.negf %189 : vector<8x256xf32>
    %192 = math.exp %191 : vector<8x256xf32>
    %cst_71 = arith.constant 1.000000e+00 : f32
    %193 = vector.broadcast %cst_71 : f32 to vector<8x256xf32>
    %194 = arith.addf %193, %192 : vector<8x256xf32>
    %195 = arith.divf %193, %194 : vector<8x256xf32>
    %196 = vector.shape_cast %75 : vector<1x256xi1> to vector<1x256xi1>
    %197 = vector.broadcast %196 : vector<1x256xi1> to vector<8x256xi1>
    %198 = arith.select %197, %190, %195 : vector<8x256xi1>, vector<8x256xf32>
    %199 = vector.extract_strided_slice %198 {offsets = [0, 0], sizes = [8, 64], strides = [1, 1]} : vector<8x256xf32> to vector<8x64xf32>
    %200 = vector.extract_strided_slice %198 {offsets = [0, 64], sizes = [8, 64], strides = [1, 1]} : vector<8x256xf32> to vector<8x64xf32>
    %201 = vector.extract_strided_slice %198 {offsets = [0, 128], sizes = [8, 64], strides = [1, 1]} : vector<8x256xf32> to vector<8x64xf32>
    %202 = vector.extract_strided_slice %198 {offsets = [0, 192], sizes = [8, 64], strides = [1, 1]} : vector<8x256xf32> to vector<8x64xf32>
    %203 = arith.mulf %200, %155 : vector<8x64xf32>
    %204 = arith.mulf %199, %201 : vector<8x64xf32>
    %205 = arith.addf %203, %204 : vector<8x64xf32>
    %206 = math.tanh %205 : vector<8x64xf32>
    %207 = arith.mulf %202, %206 : vector<8x64xf32>
    %208 = arith.truncf %207 : vector<8x64xf32> to vector<8x64xbf16>
    %c0_72 = arith.constant 0 : index
    %c0_73 = arith.constant 0 : index
    %209 = vector.load %arg8[%c0_72, %c0_73] : memref<64x256xbf16, #tpu.memory_space<vmem>>, vector<64x256xbf16>
    %cst_74 = arith.constant dense<0.000000e+00> : vector<8x256xf32>
    %210 = tpu.matmul %208, %209, %cst_74 {dimension_numbers = #tpu.dot_dimension_numbers<[1], [0], [0], [1], [0, 0, 1, 1], [], []>} : vector<8x64xbf16>, vector<64x256xbf16>, vector<8x256xf32> -> vector<8x256xf32>
    %211 = arith.truncf %185 : vector<8x64xf32> to vector<8x64xbf16>
    %c0_75 = arith.constant 0 : index
    %c0_76 = arith.constant 0 : index
    %212 = vector.load %arg9[%c0_75, %c0_76] : memref<64x256xbf16, #tpu.memory_space<vmem>>, vector<64x256xbf16>
    %cst_77 = arith.constant dense<0.000000e+00> : vector<8x256xf32>
    %213 = tpu.matmul %211, %212, %cst_77 {dimension_numbers = #tpu.dot_dimension_numbers<[1], [0], [0], [1], [0, 0, 1, 1], [], []>} : vector<8x64xbf16>, vector<64x256xbf16>, vector<8x256xf32> -> vector<8x256xf32>
    %214 = arith.addf %210, %213 : vector<8x256xf32>
    %c0_78 = arith.constant 0 : index
    %c0_79 = arith.constant 0 : index
    %215 = vector.load %arg10[%c0_78, %c0_79] : memref<1x256xf32, #tpu.memory_space<vmem>>, vector<1x256xf32>
    %216 = vector.broadcast %215 : vector<1x256xf32> to vector<8x256xf32>
    %217 = arith.addf %214, %216 : vector<8x256xf32>
    %218 = math.tanh %217 : vector<8x256xf32>
    %219 = arith.negf %217 : vector<8x256xf32>
    %220 = math.exp %219 : vector<8x256xf32>
    %cst_80 = arith.constant 1.000000e+00 : f32
    %221 = vector.broadcast %cst_80 : f32 to vector<8x256xf32>
    %222 = arith.addf %221, %220 : vector<8x256xf32>
    %223 = arith.divf %221, %222 : vector<8x256xf32>
    %224 = vector.shape_cast %75 : vector<1x256xi1> to vector<1x256xi1>
    %225 = vector.broadcast %224 : vector<1x256xi1> to vector<8x256xi1>
    %226 = arith.select %225, %218, %223 : vector<8x256xi1>, vector<8x256xf32>
    %227 = vector.extract_strided_slice %226 {offsets = [0, 0], sizes = [8, 64], strides = [1, 1]} : vector<8x256xf32> to vector<8x64xf32>
    %228 = vector.extract_strided_slice %226 {offsets = [0, 64], sizes = [8, 64], strides = [1, 1]} : vector<8x256xf32> to vector<8x64xf32>
    %229 = vector.extract_strided_slice %226 {offsets = [0, 128], sizes = [8, 64], strides = [1, 1]} : vector<8x256xf32> to vector<8x64xf32>
    %230 = vector.extract_strided_slice %226 {offsets = [0, 192], sizes = [8, 64], strides = [1, 1]} : vector<8x256xf32> to vector<8x64xf32>
    %231 = arith.mulf %228, %183 : vector<8x64xf32>
    %232 = arith.mulf %227, %229 : vector<8x64xf32>
    %233 = arith.addf %231, %232 : vector<8x64xf32>
    %234 = math.tanh %233 : vector<8x64xf32>
    %235 = arith.mulf %230, %234 : vector<8x64xf32>
    %236 = vector.extract_strided_slice %80 {offsets = [24, 0], sizes = [8, 256], strides = [1, 1]} : vector<32x256xf32> to vector<8x256xf32>
    %c0_81 = arith.constant 0 : index
    %c0_82 = arith.constant 0 : index
    %237 = vector.load %arg6[%c0_81, %c0_82] : memref<64x256xbf16, #tpu.memory_space<vmem>>, vector<64x256xbf16>
    %cst_83 = arith.constant dense<0.000000e+00> : vector<8x256xf32>
    %238 = tpu.matmul %208, %237, %cst_83 {dimension_numbers = #tpu.dot_dimension_numbers<[1], [0], [0], [1], [0, 0, 1, 1], [], []>} : vector<8x64xbf16>, vector<64x256xbf16>, vector<8x256xf32> -> vector<8x256xf32>
    %239 = arith.addf %236, %238 : vector<8x256xf32>
    %240 = math.tanh %239 : vector<8x256xf32>
    %241 = arith.negf %239 : vector<8x256xf32>
    %242 = math.exp %241 : vector<8x256xf32>
    %cst_84 = arith.constant 1.000000e+00 : f32
    %243 = vector.broadcast %cst_84 : f32 to vector<8x256xf32>
    %244 = arith.addf %243, %242 : vector<8x256xf32>
    %245 = arith.divf %243, %244 : vector<8x256xf32>
    %246 = vector.shape_cast %75 : vector<1x256xi1> to vector<1x256xi1>
    %247 = vector.broadcast %246 : vector<1x256xi1> to vector<8x256xi1>
    %248 = arith.select %247, %240, %245 : vector<8x256xi1>, vector<8x256xf32>
    %249 = vector.extract_strided_slice %248 {offsets = [0, 0], sizes = [8, 64], strides = [1, 1]} : vector<8x256xf32> to vector<8x64xf32>
    %250 = vector.extract_strided_slice %248 {offsets = [0, 64], sizes = [8, 64], strides = [1, 1]} : vector<8x256xf32> to vector<8x64xf32>
    %251 = vector.extract_strided_slice %248 {offsets = [0, 128], sizes = [8, 64], strides = [1, 1]} : vector<8x256xf32> to vector<8x64xf32>
    %252 = vector.extract_strided_slice %248 {offsets = [0, 192], sizes = [8, 64], strides = [1, 1]} : vector<8x256xf32> to vector<8x64xf32>
    %253 = arith.mulf %250, %205 : vector<8x64xf32>
    %254 = arith.mulf %249, %251 : vector<8x64xf32>
    %255 = arith.addf %253, %254 : vector<8x64xf32>
    %256 = math.tanh %255 : vector<8x64xf32>
    %257 = arith.mulf %252, %256 : vector<8x64xf32>
    %258 = arith.truncf %257 : vector<8x64xf32> to vector<8x64xbf16>
    %c0_85 = arith.constant 0 : index
    %c0_86 = arith.constant 0 : index
    %259 = vector.load %arg8[%c0_85, %c0_86] : memref<64x256xbf16, #tpu.memory_space<vmem>>, vector<64x256xbf16>
    %cst_87 = arith.constant dense<0.000000e+00> : vector<8x256xf32>
    %260 = tpu.matmul %258, %259, %cst_87 {dimension_numbers = #tpu.dot_dimension_numbers<[1], [0], [0], [1], [0, 0, 1, 1], [], []>} : vector<8x64xbf16>, vector<64x256xbf16>, vector<8x256xf32> -> vector<8x256xf32>
    %261 = arith.truncf %235 : vector<8x64xf32> to vector<8x64xbf16>
    %c0_88 = arith.constant 0 : index
    %c0_89 = arith.constant 0 : index
    %262 = vector.load %arg9[%c0_88, %c0_89] : memref<64x256xbf16, #tpu.memory_space<vmem>>, vector<64x256xbf16>
    %cst_90 = arith.constant dense<0.000000e+00> : vector<8x256xf32>
    %263 = tpu.matmul %261, %262, %cst_90 {dimension_numbers = #tpu.dot_dimension_numbers<[1], [0], [0], [1], [0, 0, 1, 1], [], []>} : vector<8x64xbf16>, vector<64x256xbf16>, vector<8x256xf32> -> vector<8x256xf32>
    %264 = arith.addf %260, %263 : vector<8x256xf32>
    %c0_91 = arith.constant 0 : index
    %c0_92 = arith.constant 0 : index
    %265 = vector.load %arg10[%c0_91, %c0_92] : memref<1x256xf32, #tpu.memory_space<vmem>>, vector<1x256xf32>
    %266 = vector.broadcast %265 : vector<1x256xf32> to vector<8x256xf32>
    %267 = arith.addf %264, %266 : vector<8x256xf32>
    %268 = math.tanh %267 : vector<8x256xf32>
    %269 = arith.negf %267 : vector<8x256xf32>
    %270 = math.exp %269 : vector<8x256xf32>
    %cst_93 = arith.constant 1.000000e+00 : f32
    %271 = vector.broadcast %cst_93 : f32 to vector<8x256xf32>
    %272 = arith.addf %271, %270 : vector<8x256xf32>
    %273 = arith.divf %271, %272 : vector<8x256xf32>
    %274 = vector.shape_cast %75 : vector<1x256xi1> to vector<1x256xi1>
    %275 = vector.broadcast %274 : vector<1x256xi1> to vector<8x256xi1>
    %276 = arith.select %275, %268, %273 : vector<8x256xi1>, vector<8x256xf32>
    %277 = vector.extract_strided_slice %276 {offsets = [0, 0], sizes = [8, 64], strides = [1, 1]} : vector<8x256xf32> to vector<8x64xf32>
    %278 = vector.extract_strided_slice %276 {offsets = [0, 64], sizes = [8, 64], strides = [1, 1]} : vector<8x256xf32> to vector<8x64xf32>
    %279 = vector.extract_strided_slice %276 {offsets = [0, 128], sizes = [8, 64], strides = [1, 1]} : vector<8x256xf32> to vector<8x64xf32>
    %280 = vector.extract_strided_slice %276 {offsets = [0, 192], sizes = [8, 64], strides = [1, 1]} : vector<8x256xf32> to vector<8x64xf32>
    %281 = arith.mulf %278, %233 : vector<8x64xf32>
    %282 = arith.mulf %277, %279 : vector<8x64xf32>
    %283 = arith.addf %281, %282 : vector<8x64xf32>
    %284 = math.tanh %283 : vector<8x64xf32>
    %285 = arith.mulf %280, %284 : vector<8x64xf32>
    %286 = arith.truncf %285 : vector<8x64xf32> to vector<8x64xbf16>
    %c0_94 = arith.constant 0 : index
    %c0_95 = arith.constant 0 : index
    %287 = vector.load %arg11[%c0_94, %c0_95] : memref<64x5xbf16, #tpu.memory_space<vmem>>, vector<64x5xbf16>
    %cst_96 = arith.constant dense<0.000000e+00> : vector<8x5xf32>
    %288 = tpu.matmul %286, %287, %cst_96 {dimension_numbers = #tpu.dot_dimension_numbers<[1], [0], [0], [1], [0, 0, 1, 1], [], []>} : vector<8x64xbf16>, vector<64x5xbf16>, vector<8x5xf32> -> vector<8x5xf32>
    %c0_97 = arith.constant 0 : index
    %c0_98 = arith.constant 0 : index
    %289 = vector.load %arg12[%c0_97, %c0_98] : memref<1x5xf32, #tpu.memory_space<vmem>>, vector<1x5xf32>
    %290 = vector.broadcast %289 : vector<1x5xf32> to vector<8x5xf32>
    %291 = arith.addf %288, %290 : vector<8x5xf32>
    %292 = vector.extract_strided_slice %291 {offsets = [0, 0], sizes = [2, 5], strides = [1, 1]} : vector<8x5xf32> to vector<2x5xf32>
    %c0_99 = arith.constant 0 : index
    %c0_100 = arith.constant 0 : index
    %293 = vector.load %arg13[%c0_99, %c0_100] : memref<2x5xf32, #tpu.memory_space<vmem>>, vector<2x5xf32>
    tpu.vector_store %arg13[%c0_99, %c0_100], %292 {strides = array<i32>} : memref<2x5xf32, #tpu.memory_space<vmem>>, vector<2x5xf32>,
    return
  }
}

</mosaic_0001>

<bundles_post_ra>
// kernel: lstm_model_forward.1
= control target key start
LH: loop header
LB: loop body
LE: loop exit
PB: predicated region body
PF: predicated region fallthrough
CT: control target
= control target key end

     0   :  { %18 = vsyncpa [#allocation3], 0  ;;  %s3810_s0 = inlined_call_operand.vmem [shape: f32[2,16,3], index: 0, kind: input, shape index: {}]   ;;  %s3811_s1 = inlined_call_operand.hbm [shape: bf16[3,3,16], index: 1, kind: input, shape index: {}]   ;;  %s3812_s2 = inlined_call_operand.hbm [shape: f32[1,16], index: 2, kind: input, shape index: {}]   ;;  %s3813_s3 = inlined_call_operand.vmem [shape: bf16[3,16,32], index: 3, kind: input, shape index: {}]   ;;  %s3814_s4 = inlined_call_operand.hbm [shape: f32[1,32], index: 4, kind: input, shape index: {}]   ;;  %s3815_s5 = inlined_call_operand.hbm [shape: bf16[32,256], index: 5, kind: input, shape index: {}]   ;;  %s3816_s6 = inlined_call_operand.vmem [shape: bf16[64,256], index: 6, kind: input, shape index: {}]   ;;  %s3817_s7 = inlined_call_operand.vmem [shape: f32[1,256], index: 7, kind: input, shape index: {}]   ;;  %s3818_s8 = inlined_call_operand.hbm [shape: bf16[64,256], index: 8, kind: input, shape index: {}]   ;;  %s3819_s9 = inlined_call_operand.hbm [shape: bf16[64,256], index: 9, kind: input, shape index: {}]   ;;  %s3820_s10 = inlined_call_operand.hbm [shape: f32[1,256], index: 10, kind: input, shape index: {}]   ;;  %s3821_s11 = inlined_call_operand.vmem [shape: bf16[64,5], index: 11, kind: input, shape index: {}]   ;;  %s3822_s12 = inlined_call_operand.hbm [shape: f32[1,5], index: 12, kind: input, shape index: {}]   ;;  %s3823_s13 = inlined_call_operand.hbm [shape: f32[2,5], index: 13, kind: output, shape index: {}]  }
   0x1   :  { %19 = vsyncpa [#allocation6], 0 }
   0x2   :  { %20 = vsyncpa [#allocation9], 0 }
   0x3   :  { %21 = vsyncpa [#allocation12], 0 }
   0x4   :  { %22 = vsyncpa [#allocation15], 0 }
   0x5   :  { %23 = vsyncpa [#allocation4], 0  ;;  %s3036_s25 = smov [#allocation5]   ;;  %s3037_s27 = smov [#allocation8]  }
   0x6   :  { %s44_s26 = sshll.u32 %s3036_s25, 4  ;;  %s65_s28 = sshll.u32 %s3037_s27, 4  ;;  %s45_s26 = int_to_ptr.vmem [resolvable:$true] %s44_s26  ;;  %s66_s28 = int_to_ptr.vmem [resolvable:$true] %s65_s28 }
   0x7   :  { %s2852_s29 = scalar_lea.vmem %s45_s26, 16  ;;  %s2856_s30 = scalar_lea.vmem %s45_s26, 32 }
   0x8   :  { %p2853_p0 = scmp.ne.s32.totalorder %s45_s26, %s2852_s29  ;;  %p2857_p1 = scmp.lt.s32.totalorder %s45_s26, %s45_s26 }
   0x9   :  { %p2858_p2 = scmp.lt.s32.totalorder %s2856_s30, %s2852_s29 }
   0xb   :  { %p2859_p3 = por %p2858_p2, %p2857_p1 }
   0xd   :  { %p2860_p4 = pnand %p2859_p3, %p2853_p0 }
   0xf   :  { %2863 = shalt.err (!%p2860_p4)
}
  0x10   :  { %47 = dma.hbm_to_vmem [thread:$0]  %s3812_s2, 16, %s45_s26, [#allocation6]  }
  0x11   :  { %s2872_s16 = scalar_lea.vmem %s66_s28, 512  ;;  %p2877_p6 = scmp.lt.s32.totalorder %s66_s28, %s66_s28 }
  0x12   :  { %p2873_p5 = scmp.ne.s32.totalorder %s66_s28, %s2872_s16  ;;  %p2878_p7 = scmp.lt.s32.totalorder %s2872_s16, %s2872_s16 }
  0x14   :  { %p2879_p8 = por %p2878_p7, %p2877_p6 }
  0x16   :  { %p2880_p9 = pnand %p2879_p8, %p2873_p5 }
  0x18   :  { %2883 = shalt.err (!%p2880_p9)
}
  0x19   :  { %s3038_s17 = smov 128   ;;  %s3039_s18 = smov 8  }
  0x1a   :  { %71 = dma.hbm_to_vmem [thread:$0]  %s3815_s5, 512, %s66_s28, [#allocation9], %s3038_s17, %s3038_s17, %s3039_s18  }
  0x1b   :  { %s3040_s21 = smov [#allocation11]   ;;  %s3041_s23 = smov [#allocation2]  }
  0x1c   :  { %s93_s22 = sshll.u32 %s3040_s21, 4  ;;  %s31_s2 = sshll.u32 %s3041_s23, 4  ;;  %s94_s22 = int_to_ptr.vmem [resolvable:$true] %s93_s22  ;;  %s32_s2 = int_to_ptr.vmem [resolvable:$true] %s31_s2 }
  0x1d   :  { %s2892_s24 = scalar_lea.vmem %s94_s22, 1024  ;;  %p2897_p11 = scmp.lt.s32.totalorder %s94_s22, %s94_s22 }
  0x1e   :  { %p2893_p10 = scmp.ne.s32.totalorder %s94_s22, %s2892_s24  ;;  %p2898_p12 = scmp.lt.s32.totalorder %s2892_s24, %s2892_s24 }
  0x20   :  { %p2899_p13 = por %p2898_p12, %p2897_p11 }
  0x22   :  { %p2900_p0 = pnand %p2899_p13, %p2893_p10 }
  0x24   :  { %2903 = shalt.err (!%p2900_p0)
}
  0x25   :  { %99 = dma.hbm_to_vmem [thread:$0]  %s3819_s9, 1024, %s94_s22, [#allocation12], %s3038_s17, %s3038_s17, %s3039_s18  }
  0x26   :  { %s2912_s5 = scalar_lea.vmem %s32_s2, 96  ;;  %p2917_p2 = scmp.lt.s32.totalorder %s32_s2, %s32_s2 }
  0x27   :  { %p2913_p1 = scmp.ne.s32.totalorder %s32_s2, %s2912_s5  ;;  %p2918_p3 = scmp.lt.s32.totalorder %s2912_s5, %s2912_s5 }
  0x29   :  { %p2919_p4 = por %p2918_p3, %p2917_p2 }
  0x2b   :  { %p2920_p5 = pnand %p2919_p4, %p2913_p1 }
  0x2d   :  { %2923 = shalt.err (!%p2920_p5)
}
  0x2e   :  { %s3042_s27 = smov 32   ;;  %s3043_s28 = smov 2  }
  0x2f   :  { %37 = dma.hbm_to_vmem [thread:$0]  %s3811_s1, 96, %s32_s2, [#allocation3], %s3042_s27, %s3042_s27, %s3043_s28  }
  0x30   :  { %s3044_s14 = smov [#allocation7]   ;;  %s3045_s16 = smov [#allocation10]  }
  0x31   :  { %s56_s15 = sshll.u32 %s3044_s14, 4  ;;  %s81_s19 = sshll.u32 %s3045_s16, 4  ;;  %s57_s15 = int_to_ptr.vmem [resolvable:$true] %s56_s15  ;;  %s82_s19 = int_to_ptr.vmem [resolvable:$true] %s81_s19 }
  0x32   :  { %s2932_s9 = scalar_lea.vmem %s57_s15, 16  ;;  %s2936_s20 = scalar_lea.vmem %s57_s15, 32 }
  0x33   :  { %p2933_p6 = scmp.ne.s32.totalorder %s57_s15, %s2932_s9  ;;  %p2937_p7 = scmp.lt.s32.totalorder %s57_s15, %s57_s15 }
  0x34   :  { %p2938_p8 = scmp.lt.s32.totalorder %s2936_s20, %s2932_s9 }
  0x36   :  { %p2939_p9 = por %p2938_p8, %p2937_p7 }
  0x38   :  { %p2940_p10 = pnand %p2939_p9, %p2933_p6 }
  0x3a   :  { %2943 = shalt.err (!%p2940_p10)
}
  0x3b   :  { %59 = dma.hbm_to_vmem [thread:$0]  %s3814_s4, 16, %s57_s15, [#allocation6]  }
  0x3c   :  { %s2952_s23 = scalar_lea.vmem %s82_s19, 1024  ;;  %p2957_p12 = scmp.lt.s32.totalorder %s82_s19, %s82_s19 }
  0x3d   :  { %p2953_p11 = scmp.ne.s32.totalorder %s82_s19, %s2952_s23  ;;  %p2958_p13 = scmp.lt.s32.totalorder %s2952_s23, %s2952_s23 }
  0x3f   :  { %p2959_p0 = por %p2958_p13, %p2957_p12 }
  0x41   :  { %p2960_p1 = pnand %p2959_p0, %p2953_p11 }
  0x43   :  { %2963 = shalt.err (!%p2960_p1)
}
  0x44   :  { %87 = dma.hbm_to_vmem [thread:$0]  %s3818_s8, 1024, %s82_s19, [#allocation9], %s3038_s17, %s3038_s17, %s3039_s18  }
  0x45   :  { %s3046_s24 = smov [#allocation13]   ;;  %s3047_s26 = smov [#allocation14]  }
  0x46   :  { %s106_s25 = sshll.u32 %s3046_s24, 4  ;;  %s118_s5 = sshll.u32 %s3047_s26, 4  ;;  %s107_s25 = int_to_ptr.vmem [resolvable:$true] %s106_s25  ;;  %s119_s5 = int_to_ptr.vmem [resolvable:$true] %s118_s5 }
  0x47   :  { %s2972_s4 = scalar_lea.vmem %s107_s25, 32  ;;  %p2977_p3 = scmp.lt.s32.totalorder %s107_s25, %s107_s25 }
  0x48   :  { %p2973_p2 = scmp.ne.s32.totalorder %s107_s25, %s2972_s4  ;;  %p2978_p4 = scmp.lt.s32.totalorder %s2972_s4, %s2972_s4 }
  0x4a   :  { %p2979_p5 = por %p2978_p4, %p2977_p3 }
  0x4c   :  { %p2980_p6 = pnand %p2979_p5, %p2973_p2 }
  0x4e   :  { %2983 = shalt.err (!%p2980_p6)
}
  0x4f   :  { %109 = dma.hbm_to_vmem [thread:$0]  %s3820_s10, 32, %s107_s25, [#allocation12]  }
  0x50   :  { %s2992_s29 = scalar_lea.vmem %s119_s5, 16  ;;  %s2996_s8 = scalar_lea.vmem %s119_s5, 32 }
  0x51   :  { %p2993_p7 = scmp.ne.s32.totalorder %s119_s5, %s2992_s29  ;;  %p2997_p8 = scmp.lt.s32.totalorder %s119_s5, %s119_s5 }
  0x52   :  { %p2998_p9 = scmp.lt.s32.totalorder %s2996_s8, %s2992_s29 }
  0x54   :  { %p2999_p10 = por %p2998_p9, %p2997_p8 }
  0x56   :  { %p3000_p11 = pnand %p2999_p10, %p2993_p7 }
  0x58   :  { %3003 = shalt.err (!%p3000_p11)
}
  0x59   :  { %121 = dma.hbm_to_vmem [thread:$0]  %s3822_s12, 16, %s119_s5, [#allocation15]  }
  0x5a   :  { %3024 = dma.done.wait [#allocation3], 96  }
  0x5b   :  { %3025 = vsyncadd [#allocation3], 4294967200 }
  0x5c   :  { %3026 = dma.done.wait [#allocation6], 32  }
  0x5d   :  { %3027 = vsyncadd [#allocation6], 4294967264 }
  0x5e   :  { %3028 = dma.done.wait [#allocation9], 1536  }
  0x5f   :  { %3029 = vsyncadd [#allocation9], 4294965760 }
  0x60   :  { %3030 = dma.done.wait [#allocation12], 1056  }
  0x61   :  { %3031 = vsyncadd [#allocation12], 4294966240 }
  0x62   :  { %3032 = dma.done.wait [#allocation15], 16  }
  0x63   :  { %3033 = vsyncadd [#allocation15], 4294967280  ;;  %vm612_vm0 = vcmask 1040384   ;;  %v147_v0 = vlaneseq  ;;  %vm613_vm1 = vcmask 1041408   ;;  %v3048_v1 = vmov 65535   ;;  %v150_v10 = vld [vmem:[%s3810_s0] sm:$0xff] }
  0x64   :  { %v614_v2 = vsel %vm612_vm0, 4294967295, %v3048_v1  ;;  %v3049_v4 = vmov 1966171168   ;;  %v559_v9 = vld [vmem:[#allocation2 + $0x2] sm:$0x3]  ;;  %v2422_v12 = vld [vmem:[%s3810_s0 + $0x10] sm:$0xff]  ;;  %v154_v14 = vcombine.high %v150_v10, %v150_v10 }
  0x65   :  { %v3159_v3 = vshrl.u32 %v147_v0, 7  ;;  %v156_v5 = vunpack.c.l.s4 %v3049_v4  ;;  %v3161_v7 = vsel %vm613_vm1, %v614_v2, 0  ;;  %v354_v16 = vcombine.high %v2422_v12, %v2422_v12  ;;  %v841_v17 = vld [vmem:[#allocation2 + $0x4] sm:$0x3]  ;;  %v151_v18 = vld [vmem:[%s3810_s0 + $0x8] sm:$0xff]  ;;  %v2423_v45 = vld [vmem:[%s3810_s0 + $0x18] sm:$0xff] }
  0x66   :  { %v617_v13 = vand.u32 %v3161_v7, %v559_v9  ;;  %v3183_v20 = vand.u32 %v841_v17, %v3161_v7  ;;  %v203_v21 = vcombine.high %v151_v18, %v151_v18  ;;  %vm569_vm4 = vcmask 1043456   ;;  %v557_v55 = vld [vmem:[#allocation2] sm:$0x3]  ;;  %s3054_s23 = smov [#allocation16]  }
  0x67   :  { %v157_v6 = vunpack.c.0.s8 %v156_v5  ;;  %vm149_vm2 = vcmp.eq.s32.totalorder %v3159_v3, 0  ;;  %v3171_v11 = vsub.s32 0, %v3159_v3  ;;  %vm348_vm3 = vcmp.eq.s32.totalorder %v3159_v3, 1  ;;  %s2409_s1 = sshll.u32 %s3054_s23, 4  ;;  %s2410_s1 = int_to_ptr.vmem [resolvable:$true] %s2409_s1 }
  0x68   :  { %2578 = vmatprep.subr.bf16.mxu0 %v617_v13  ;;  %2674 = vmatprep.subr.bf16.mxu1 %v617_v13  ;;  %vm587_vm5 = vcmask 23552   ;;  %v3050_v48 = vmov 0.0   ;;  %v403_v4 = vcombine.high %v2423_v45, %v2423_v45  ;;  %vm1022_vm6 = vcmask 130048   ;;  %p3009_p13 = scmp.lt.s32.totalorder %s2410_s1, %s2410_s1 }
  0x69   :  { %v3164_v8 = vsub.s32 %v157_v6, %v3159_v3  ;;  %2579 = vmatpush3.bf16.msra.mxu0 %v617_v13  ;;  %2675 = vmatpush3.bf16.msra.mxu1 %v617_v13  ;;  %vm1334_vm7 = vcmask 261120   ;;  %vm1442_vm9 = vcmask 523264   ;;  %vm3053_vm10 = vmmov 0  }
  0x6a   :  { %2614 = vmatprep.subr.bf16.mxu0 %v3183_v20  ;;  %vm2401_vm11 = vcmask 33792  }
  0x6b   :  { %v161_v15 = vrot.slane %v150_v10, %v3164_v8  ;;  %v361_v19 = vrot.slane %v2422_v12, %v3164_v8  ;;  %v3186_v22 = vrot.slane %v151_v18, %v3164_v8  ;;  %v3189_v23 = vrot.slane %v154_v14, %v3164_v8 }
  0x6c   :  { %v3194_v26 = vrot.slane %v354_v16, %v3164_v8  ;;  %v217_v62 = vrot.slane %v203_v21, %v3164_v8  ;;  %v3254_v5 = vrot.slane %v2423_v45, %v3164_v8  ;;  %v417_v14 = vrot.slane %v403_v4, %v3164_v8 }
  0x6d   :  { %v169_v24 = vcombine.high %v161_v15, %v161_v15  ;;  %v177_v25 = vrot.slane %v161_v15, %v3164_v8  ;;  %v369_v27 = vcombine.high %v361_v19, %v361_v19  ;;  %v377_v28 = vrot.slane %v361_v19, %v3164_v8 }
  0x6e   :  { %v3202_v32 = vrot.slane %v3189_v23, %v3164_v8  ;;  %v3208_v36 = vrot.slane %v3194_v26, %v3164_v8  ;;  %v218_v63 = vcombine.high %v3186_v22, %v3186_v22  ;;  %v219_v9 = vcombine.high %v217_v62, %v217_v62 }
  0x6f   :  { %v191_v29 = vrot.slane %v169_v24, %v3164_v8  ;;  %v199_v30 = vcombine.high %v177_v25, %v177_v25  ;;  %v255_v31 = vrot.slane %v177_v25, %v3171_v11  ;;  %v391_v33 = vrot.slane %v369_v27, %v3164_v8 }
  0x70   :  { %v399_v34 = vcombine.high %v377_v28, %v377_v28  ;;  %v455_v35 = vrot.slane %v377_v28, %v3171_v11  ;;  %v271_v53 = vrot.slane %v3202_v32, %v3171_v11  ;;  %v471_v59 = vrot.slane %v3208_v36, %v3171_v11 }
  0x71   :  { %v201_v37 = vcombine.high %v191_v29, %v191_v29  ;;  %v259_v38 = vrot.slane %v191_v29, %v3171_v11  ;;  %v263_v39 = vrot.slane %v199_v30, %v3171_v11  ;;  %v332_v40 = vsel %vm149_vm2, %v255_v31, 0.0 }
  0x72   :  { %v401_v41 = vcombine.high %v391_v33, %v391_v33  ;;  %v459_v42 = vrot.slane %v391_v33, %v3171_v11  ;;  %v463_v43 = vrot.slane %v399_v34, %v3171_v11  ;;  %v532_v44 = vsel %vm348_vm3, %v455_v35, %v332_v40 }
  0x73   :  { %v333_v46 = vsel %vm149_vm2, %v259_v38, 0.0  ;;  %v334_v47 = vsel %vm149_vm2, %v263_v39, 0.0  ;;  %v3226_v49 = vpack.c.bf16 %v532_v44, %v3050_v48  ;;  %v267_v50 = vrot.slane %v201_v37, %v3171_v11 }
  0x74   :  { %v533_v51 = vsel %vm348_vm3, %v459_v42, %v333_v46  ;;  %v534_v52 = vsel %vm348_vm3, %v463_v43, %v334_v47  ;;  %v467_v54 = vrot.slane %v401_v41, %v3171_v11  ;;  %v336_v60 = vsel %vm149_vm2, %v271_v53, 0.0 }
  0x75   :  { %v3236_v56 = vpack.c.bf16 %v534_v52, %v533_v51  ;;  %v570_v57 = vrot.slane %v3226_v49, 4  ;;  %v335_v58 = vsel %vm149_vm2, %v267_v50, 0.0  ;;  %v536_v2 = vsel %vm348_vm3, %v471_v59, %v336_v60 }
  0x76   :  { %v535_v61 = vsel %vm348_vm3, %v467_v54, %v335_v58  ;;  %v233_v10 = vrot.slane %v217_v62, %v3164_v8  ;;  %v3260_v12 = vrot.slane %v218_v63, %v3164_v8  ;;  %v418_v15 = vcombine.high %v3254_v5, %v3254_v5 }
  0x77   :  { %v571_v1 = vrot.slane %v3236_v56, 4  ;;  %v3256_v6 = vpack.c.bf16 %v536_v2, %v535_v61  ;;  %v3267_v16 = vand.u32 %v3161_v7, %v557_v55  ;;  %v247_v18 = vrot.slane %v219_v9, %v3164_v8 }
  0x78   :  { %v249_v19 = vcombine.high %v233_v10, %v233_v10  ;;  %v250_v21 = vcombine.high %v3260_v12, %v3260_v12  ;;  %v303_v24 = vrot.slane %v233_v10, %v3171_v11  ;;  %v419_v25 = vcombine.high %v417_v14, %v417_v14 }
  0x79   :  { %v572_v13 = vsel %vm569_vm4, %v570_v57, %v571_v1  ;;  %v573_v17 = vrot.slane %v3256_v6, 4  ;;  %v433_v27 = vrot.slane %v417_v14, %v3164_v8  ;;  %v3277_v28 = vrot.slane %v418_v15, %v3164_v8  ;;  %2596 = vmatprep.subr.bf16.mxu1 %v3267_v16 }
  0x7a   :  { %2580 = vmatprep.mubr.msk.bf16.mxu0 %vm587_vm5, %v572_v13  ;;  %v299_v29 = vrot.slane %v250_v21, %v3171_v11  ;;  %v307_v30 = vrot.slane %v247_v18, %v3171_v11  ;;  %v311_v31 = vrot.slane %v249_v19, %v3171_v11  ;;  %v344_v33 = vsel %vm149_vm2, %v303_v24, 0.0 }
  0x7b   :  { %v574_v7 = vsel %vm569_vm4, %v571_v1, %v573_v17  ;;  %v447_v34 = vrot.slane %v419_v25, %v3164_v8  ;;  %v449_v35 = vcombine.high %v433_v27, %v433_v27  ;;  %v450_v37 = vcombine.high %v3277_v28, %v3277_v28 }
  0x7c   :  { %2581 = vmatmul.mubr.msk.bf16.vlgmr.msra.gmra.mxu0 %vm587_vm5, %v574_v7  ;;  %v343_v38 = vsel %vm149_vm2, %v299_v29, 0.0  ;;  %v345_v39 = vsel %vm149_vm2, %v307_v30, 0.0  ;;  %v346_v40 = vsel %vm149_vm2, %v311_v31, 0.0  ;;  %v503_v41 = vrot.slane %v433_v27, %v3171_v11 }
  0x7d   :  { %2615 = vmatpush3.bf16.msra.mxu0 %v3183_v20  ;;  %v499_v42 = vrot.slane %v450_v37, %v3171_v11  ;;  %v507_v43 = vrot.slane %v447_v34, %v3171_v11  ;;  %v511_v44 = vrot.slane %v449_v35, %v3171_v11  ;;  %v251_v45 = vcombine.high %v247_v18, %v247_v18 }
  0x7e   :  { %v544_v20 = vsel %vm348_vm3, %v503_v41, %v344_v33  ;;  %v451_v46 = vcombine.high %v447_v34, %v447_v34  ;;  %v170_v47 = vcombine.high %v3189_v23, %v3189_v23  ;;  %v200_v50 = vcombine.high %v3202_v32, %v3202_v32 }
  0x7f   :  { %v543_v51 = vsel %vm348_vm3, %v499_v42, %v343_v38  ;;  %v545_v52 = vsel %vm348_vm3, %v507_v43, %v345_v39  ;;  %v546_v53 = vsel %vm348_vm3, %v511_v44, %v346_v40  ;;  %v315_v54 = vrot.slane %v251_v45, %v3171_v11 }
  0x80   :  { %v3316_v55 = vpack.c.bf16 %v544_v20, %v543_v51  ;;  %v3318_v57 = vpack.c.bf16 %v546_v53, %v545_v52  ;;  %v515_v23 = vrot.slane %v451_v46, %v3171_v11  ;;  %v198_v58 = vrot.slane %v170_v47, %v3164_v8  ;;  %v3429_v52 = vld [vmem:[%s3813_s3] sm:$0xff]  }
  0x81   :  { %v347_v32 = vsel %vm149_vm2, %v315_v54, 0.0  ;;  %v279_v59 = vrot.slane %v200_v50, %v3171_v11  ;;  %v370_v60 = vcombine.high %v3194_v26, %v3194_v26  ;;  %v400_v61 = vcombine.high %v3208_v36, %v3208_v36 }
  0x82   :  { %v581_v62 = vrot.slane %v3316_v55, 4  ;;  %v583_v63 = vrot.slane %v3318_v57, 4  ;;  %v547_v1 = vsel %vm348_vm3, %v515_v23, %v347_v32  ;;  %v275_v2 = vrot.slane %v198_v58, %v3171_v11 }
  0x83   :  { %v3335_v4 = vpack.c.bf16 %v3050_v48, %v547_v1  ;;  %v338_v9 = vsel %vm149_vm2, %v279_v59, 0.0  ;;  %v398_v26 = vrot.slane %v370_v60, %v3164_v8  ;;  %v479_v10 = vrot.slane %v400_v61, %v3171_v11 }
  0x84   :  { %v584_v36 = vsel %vm569_vm4, %v581_v62, %v583_v63  ;;  %v337_v13 = vsel %vm149_vm2, %v275_v2, 0.0  ;;  %v202_v14 = vcombine.high %v198_v58, %v198_v58  ;;  %v226_v15 = vrot.slane %v3186_v22, %v3164_v8 }
  0x85   :  { %2592 = vmatprep.mubr.msk.bf16.mxu1 %vm587_vm5, %v584_v36  ;;  %v585_v18 = vrot.slane %v3335_v4, 4  ;;  %v475_v19 = vrot.slane %v398_v26, %v3171_v11  ;;  %v538_v21 = vsel %vm348_vm3, %v479_v10, %v338_v9  ;;  %v402_v24 = vcombine.high %v398_v26, %v398_v26 }
  0x86   :  { %v283_v25 = vrot.slane %v202_v14, %v3171_v11  ;;  %v287_v27 = vrot.slane %v226_v15, %v3171_v11  ;;  %v426_v7 = vrot.slane %v3254_v5, %v3164_v8  ;;  %v248_v29 = vcombine.high %v226_v15, %v226_v15 }
  0x87   :  { %v586_v22 = vsel %vm569_vm4, %v583_v63, %v585_v18  ;;  %v537_v30 = vsel %vm348_vm3, %v475_v19, %v337_v13  ;;  %v483_v31 = vrot.slane %v402_v24, %v3171_v11  ;;  %v291_v33 = vrot.slane %v3260_v12, %v3171_v11 }
  0x88   :  { %2593 = vmatmul.mubr.msk.bf16.vlgmr.msra.gmra.mxu1 %vm587_vm5, %v586_v22  ;;  %v551_v34 = vpack.c.bf16 %v538_v21, %v537_v30  ;;  %v339_v35 = vsel %vm149_vm2, %v283_v25, 0.0  ;;  %v340_v8 = vsel %vm149_vm2, %v287_v27, 0.0  ;;  %v487_v5 = vrot.slane %v426_v7, %v3171_v11 }
  0x89   :  { %2597 = vmatpush3.bf16.msra.mxu1 %v3267_v16  ;;  %v539_v37 = vsel %vm348_vm3, %v483_v31, %v339_v35  ;;  %2598 = vmatprep.mubr.msk.bf16.mxu1 %vm587_vm5, %v3226_v49  ;;  %v295_v12 = vrot.slane %v248_v29, %v3171_v11  ;;  %v341_v38 = vsel %vm149_vm2, %v291_v33, 0.0  ;;  %v448_v39 = vcombine.high %v426_v7, %v426_v7 }
  0x8a   :  { %v575_v40 = vrot.slane %v551_v34, 4  ;;  %v540_v41 = vsel %vm348_vm3, %v487_v5, %v340_v8  ;;  %v491_v42 = vrot.slane %v3277_v28, %v3171_v11  ;;  %v3444_v5 = vld [vmem:[#allocation5] ss:$0 sm:$0xff] }
  0x8b   :  { %v552_v16 = vpack.c.bf16 %v540_v41, %v539_v37  ;;  %v342_v43 = vsel %vm149_vm2, %v295_v12, 0.0  ;;  %v495_v44 = vrot.slane %v448_v39, %v3171_v11 }
  0x8c   :  { %v576_v49 = vsel %vm569_vm4, %v573_v17, %v575_v40  ;;  %v541_v45 = vsel %vm348_vm3, %v491_v42, %v341_v38 }
  0x8d   :  { %2584 = vmatprep.mubr.msk.bf16.mxu0 %vm587_vm5, %v576_v49  ;;  %v577_v20 = vrot.slane %v552_v16, 4  ;;  %v542_v46 = vsel %vm348_vm3, %v495_v44, %v342_v43 }
  0x8e   :  { %v553_v28 = vpack.c.bf16 %v542_v46, %v541_v45 }
  0x8f   :  { %v578_v47 = vsel %vm569_vm4, %v575_v40, %v577_v20 }
  0x90   :  { %2585 = vmatmul.mubr.msk.bf16.gmra.mxu0 %vm587_vm5, %v578_v47  ;;  %2599 = vmatmul.mubr.msk.bf16.vlgmr.msra.gmra.mxu1 %vm587_vm5, %v3236_v56  ;;  %v579_v50 = vrot.slane %v553_v28, 4 }
  0x91   :  { %2602 = vmatprep.mubr.msk.bf16.mxu1 %vm587_vm5, %v3256_v6 }
  0x92   :  { %v580_v17 = vsel %vm569_vm4, %v577_v20, %v579_v50  ;;  %v582_v51 = vsel %vm569_vm4, %v579_v50, %v581_v62 }
  0x93   :  { %2588 = vmatprep.mubr.msk.bf16.mxu0 %vm587_vm5, %v580_v17 }
  0x98   :  { %2589 = vmatmul.mubr.msk.bf16.gmra.mxu0 %vm587_vm5, %v582_v51  ;;  %2603 = vmatmul.mubr.msk.bf16.gmra.mxu1 %vm587_vm5, %v551_v34 }
  0x99   :  { %2616 = vmatprep.mubr.msk.bf16.mxu0 %vm587_vm5, %v3236_v56  ;;  %2606 = vmatprep.mubr.msk.bf16.mxu1 %vm587_vm5, %v552_v16  ;;  %v2699_v56 = vld [vmem:[%s3813_s3 + $0x8] sm:$0xff]  }
  0x9a   :  { %2632 = vmatprep.subr.bf16.mxu1 %v2699_v56 }
  0x9b   :  { %2633 = vmatpush3.bf16.msra.mxu1 %v2699_v56 }
  0x9c   :  { %2642 = vmatprep.subr.bf16.mxu1 %v3429_v52 }
  0xa0   :  { %2617 = vmatmul.mubr.msk.bf16.vlgmr.msra.gmra.mxu0 %vm587_vm5, %v3256_v6  ;;  %2607 = vmatmul.mubr.msk.bf16.gmra.mxu1 %vm587_vm5, %v553_v28  ;;  %v2700_v6 = vld [vmem:[%s3813_s3 + $0x10] sm:$0xff]  }
  0xa1   :  { %2620 = vmatprep.mubr.msk.bf16.mxu0 %vm587_vm5, %v551_v34  ;;  %2610 = vmatprep.mubr.msk.bf16.mxu1 %vm587_vm5, %v3316_v55 }
  0xa2   :  { %2652 = vmatprep.subr.bf16.mxu0 %v2700_v6 }
  0xa3   :  { %2653 = vmatpush3.bf16.msra.mxu0 %v2700_v6 }
  0xa8   :  { %2621 = vmatmul.mubr.msk.bf16.gmra.mxu0 %vm587_vm5, %v552_v16  ;;  %2611 = vmatmul.mubr.msk.bf16.gmra.mxu1 %vm587_vm5, %v3318_v57 }
  0xa9   :  { %2624 = vmatprep.mubr.msk.bf16.mxu0 %vm587_vm5, %v553_v28 }
  0xb0   :  { %2625 = vmatmul.mubr.msk.bf16.gmra.mxu0 %vm587_vm5, %v3316_v55 }
  0xb1   :  { %2628 = vmatprep.mubr.msk.bf16.mxu0 %vm587_vm5, %v3318_v57 }
  0xb8   :  { %2629 = vmatmul.mubr.msk.bf16.gmra.mxu0 %vm587_vm5, %v3335_v4 }
 0x13c   :  { %v2582_v53 = vpop.f32.mrf.mxu0 }
 0x13e   :  { %v653_v54 = vpop.f32.mrf.mxu0 }
 0x140   :  { %v2583_v57 = vpop.f32.mrf.mxu0 }
 0x142   :  { %v656_v58 = vpop.f32.mrf.mxu0 }
 0x148   :  { %v3432_v55 = vpop.f32.mrf.mxu1 }
 0x14a   :  { %v3434_v23 = vpop.f32.mrf.mxu1 }
 0x14c   :  { %v3436_v32 = vpop.f32.mrf.mxu1 }
 0x14e   :  { %v3438_v59 = vpop.f32.mrf.mxu1 }
 0x150   :  { %v2586_v60 = vpop.f32.mrf.mxu0  ;;  %v2600_v61 = vpop.f32.mrf.mxu1 }
 0x151   :  { %v786_v38 = vadd.f32 %v2600_v61, %v2582_v53 }
 0x152   :  { %v669_v62 = vpop.f32.mrf.mxu0  ;;  %v777_v63 = vpop.f32.mrf.mxu1 }
 0x153   :  { %v778_v31 = vadd.f32 %v777_v63, %v653_v54 }
 0x154   :  { %v2587_v1 = vpop.f32.mrf.mxu0  ;;  %v2601_v2 = vpop.f32.mrf.mxu1 }
 0x155   :  { %v789_v35 = vadd.f32 %v2601_v2, %v2583_v57 }
 0x156   :  { %v672_v4 = vpop.f32.mrf.mxu0  ;;  %v780_v9 = vpop.f32.mrf.mxu1 }
 0x157   :  { %v781_v29 = vadd.f32 %v780_v9, %v656_v58 }
 0x158   :  { %v3440_v26 = vpop.f32.mrf.mxu0  ;;  %v2604_v10 = vpop.f32.mrf.mxu1 }
 0x159   :  { %v802_v53 = vadd.f32 %v2604_v10, %v2586_v60 }
 0x15a   :  { %v685_v36 = vpop.f32.mrf.mxu0  ;;  %v793_v13 = vpop.f32.mrf.mxu1 }
 0x15b   :  { %v794_v39 = vadd.f32 %v793_v13, %v669_v62 }
 0x15c   :  { %v2591_v14 = vpop.f32.mrf.mxu0  ;;  %v2605_v15 = vpop.f32.mrf.mxu1 }
 0x15d   :  { %v805_v17 = vadd.f32 %v2605_v15, %v2587_v1 }
 0x15e   :  { %v688_v18 = vpop.f32.mrf.mxu0  ;;  %v796_v19 = vpop.f32.mrf.mxu1 }
 0x15f   :  { %v797_v16 = vadd.f32 %v796_v19, %v672_v4 }
 0x160   :  { %v2618_v21 = vpop.f32.mrf.mxu0  ;;  %v3442_v24 = vpop.f32.mrf.mxu1 }
 0x161   :  { %v947_v43 = vadd.f32 %v2618_v21, %v786_v38 }
 0x162   :  { %v882_v25 = vpop.f32.mrf.mxu0  ;;  %v809_v27 = vpop.f32.mrf.mxu1 }
 0x163   :  { %v945_v8 = vadd.f32 %v882_v25, %v778_v31  ;;  %v970_v51 = vadd.f32 %v3444_v5, %v947_v43  ;;  %v810_v54 = vadd.f32 %v809_v27, %v685_v36 }
 0x164   :  { %v2619_v7 = vpop.f32.mrf.mxu0  ;;  %v2609_v22 = vpop.f32.mrf.mxu1 }
 0x165   :  { %v948_v40 = vadd.f32 %v2619_v7, %v789_v35  ;;  %v968_v44 = vadd.f32 %v3444_v5, %v945_v8  ;;  %v821_v27 = vadd.f32 %v2609_v22, %v2591_v14 }
 0x166   :  { %v885_v30 = vpop.f32.mrf.mxu0  ;;  %v812_v37 = vpop.f32.mrf.mxu1 }
 0x167   :  { %v946_v33 = vadd.f32 %v885_v30, %v781_v29  ;;  %v971_v46 = vadd.f32 %v3444_v5, %v948_v40  ;;  %v813_v9 = vadd.f32 %v812_v37, %v688_v18 }
 0x168   :  { %v2622_v34 = vpop.f32.mrf.mxu0  ;;  %v2612_v45 = vpop.f32.mrf.mxu1 }
 0x169   :  { %v969_v41 = vadd.f32 %v3444_v5, %v946_v33  ;;  %v985_v61 = vmax.f32 %v970_v51, %v971_v46  ;;  %v951_v1 = vadd.f32 %v2622_v34, %v802_v53  ;;  %v834_v7 = vadd.f32 %v2612_v45, %v3432_v55 }
 0x16a   :  { %v898_v12 = vpop.f32.mrf.mxu0  ;;  %v825_v57 = vpop.f32.mrf.mxu1  ;;  %v818_v34 = vadd.f32 %v3442_v24, %v3440_v26 }
 0x16b   :  { %v949_v49 = vadd.f32 %v898_v12, %v794_v39  ;;  %v984_v28 = vmax.f32 %v968_v44, %v969_v41  ;;  %v974_v30 = vadd.f32 %v3444_v5, %v951_v1  ;;  %v826_v35 = vadd.f32 %v825_v57, %v3434_v23  ;;  %v3506_v57 = vld [vmem:[%s3816_s6 + $0x24] ss:$8 sps:$4 sm:$0xff]  }
 0x16c   :  { %v2623_v42 = vpop.f32.mrf.mxu0  ;;  %v2613_v19 = vpop.f32.mrf.mxu1  ;;  %v2716_v1 = vld [vmem:[#allocation8 + $0x4] ss:$8 sps:$4 sm:$0xff]  }
 0x16d   :  { %v972_v56 = vadd.f32 %v3444_v5, %v949_v49  ;;  %v3453_v62 = vpack.c.bf16 %v984_v28, %v3050_v48  ;;  %v952_v63 = vadd.f32 %v2623_v42, %v805_v17  ;;  %v837_v14 = vadd.f32 %v2613_v19, %v3436_v32 }
 0x16e   :  { %v901_v20 = vpop.f32.mrf.mxu0  ;;  %v828_v8 = vpop.f32.mrf.mxu1 }
 0x16f   :  { %v950_v47 = vadd.f32 %v901_v20, %v797_v16  ;;  %v975_v25 = vadd.f32 %v3444_v5, %v952_v63  ;;  %v1007_v10 = vrot.slane %v3453_v62, 4  ;;  %v829_v41 = vadd.f32 %v828_v8, %v3438_v59  ;;  %v2705_v63 = vld [vmem:[#allocation8 + $0x10] ss:$8 sps:$4 sm:$0xff]  }
 0x170   :  { %v2626_v50 = vpop.f32.mrf.mxu0 }
 0x171   :  { %v973_v6 = vadd.f32 %v3444_v5, %v950_v47  ;;  %v987_v55 = vmax.f32 %v974_v30, %v975_v25  ;;  %v955_v39 = vadd.f32 %v2626_v50, %v818_v34 }
 0x172   :  { %v914_v58 = vpop.f32.mrf.mxu0 }
 0x173   :  { %v986_v2 = vmax.f32 %v972_v56, %v973_v6  ;;  %v953_v15 = vadd.f32 %v914_v58, %v810_v54  ;;  %v978_v32 = vadd.f32 %v3444_v5, %v955_v39  ;;  %v3499_v54 = vld [vmem:[%s3816_s6 + $0x30] ss:$8 sps:$4 sm:$0xff]   ;;  %v3511_v58 = vld [vmem:[%s3816_s6 + $0x20] ss:$8 sps:$4 sm:$0xff]  }
 0x174   :  { %v2627_v4 = vpop.f32.mrf.mxu0 }
 0x175   :  { %v993_v13 = vpack.c.bf16 %v986_v2, %v985_v61  ;;  %v976_v18 = vadd.f32 %v3444_v5, %v953_v15  ;;  %v956_v37 = vadd.f32 %v2627_v4, %v821_v27  ;;  %v3518_v61 = vld [vmem:[%s3816_s6 + $0x14] ss:$8 sps:$4 sm:$0xff]   ;;  %v3530_v4 = vld [vmem:[%s3816_s6 + $0x4] ss:$8 sps:$4 sm:$0xff]   ;;  %v3051_v15 = vmov 0  }
 0x176   :  { %v917_v21 = vpop.f32.mrf.mxu0  ;;  %v2707_v2 = vld [vmem:[#allocation8 + $0x14] ss:$8 sps:$4 sm:$0xff]  }
 0x177   :  { %v954_v60 = vadd.f32 %v917_v21, %v813_v9  ;;  %2654 = vmatprep.mubr.msk.bf16.mxu0 %vm1022_vm6, %v993_v13  ;;  %v1008_v36 = vrot.slane %v993_v13, 4  ;;  %v979_v26 = vadd.f32 %v3444_v5, %v956_v37  ;;  %v3535_v9 = vld [vmem:[%s3816_s6] ss:$8 sps:$4 sm:$0xff]  }
 0x178   :  { %v2630_v29 = vpop.f32.mrf.mxu0 }
 0x179   :  { %v977_v31 = vadd.f32 %v3444_v5, %v954_v60  ;;  %v1009_v33 = vsel %vm569_vm4, %v1007_v10, %v1008_v36  ;;  %v959_v38 = vadd.f32 %v2630_v29, %v834_v7  ;;  %v989_v47 = vmax.f32 %v978_v32, %v979_v26 }
 0x17a   :  { %v930_v12 = vpop.f32.mrf.mxu0  ;;  %2634 = vmatprep.mubr.msk.bf16.mxu1 %vm1022_vm6, %v1009_v33 }
 0x17b   :  { %v988_v22 = vmax.f32 %v976_v18, %v977_v31  ;;  %v957_v16 = vadd.f32 %v930_v12, %v826_v35  ;;  %v982_v44 = vadd.f32 %v3444_v5, %v959_v38 }
 0x17c   :  { %v2631_v40 = vpop.f32.mrf.mxu0 }
 0x17d   :  { %v994_v42 = vpack.c.bf16 %v988_v22, %v987_v55  ;;  %v960_v43 = vadd.f32 %v2631_v40, %v837_v14  ;;  %v980_v20 = vadd.f32 %v3444_v5, %v957_v16 }
 0x17e   :  { %v933_v23 = vpop.f32.mrf.mxu0 }
 0x17f   :  { %v1010_v24 = vrot.slane %v994_v42, 4  ;;  %v983_v49 = vadd.f32 %v3444_v5, %v960_v43  ;;  %v958_v45 = vadd.f32 %v933_v23, %v829_v41  ;;  %2655 = vmatmul.mubr.msk.bf16.vlgmr.msra.gmra.mxu0 %vm1022_vm6, %v994_v42 }
 0x181   :  { %v991_v46 = vmax.f32 %v982_v44, %v983_v49  ;;  %v981_v59 = vadd.f32 %v3444_v5, %v958_v45  ;;  %v1011_v28 = vsel %vm569_vm4, %v1008_v36, %v1010_v24 }
 0x182   :  { %2635 = vmatmul.mubr.msk.bf16.vlgmr.msra.gmra.mxu1 %vm1022_vm6, %v1011_v28 }
 0x183   :  { %v996_v50 = vpack.c.bf16 %v3050_v48, %v991_v46  ;;  %v990_v17 = vmax.f32 %v980_v20, %v981_v59  ;;  %2643 = vmatpush3.bf16.msra.mxu1 %v3429_v52  ;;  %v3494_v52 = vld [vmem:[%s3816_s6 + $0x34] ss:$8 sps:$4 sm:$0xff]  }
 0x184   :  { %1454 = vmatprep.subr.bf16.mxu0 %v3494_v52  ;;  %1353 = vmatprep.subr.bf16.mxu1 %v2707_v2 }
 0x185   :  { %v995_v51 = vpack.c.bf16 %v990_v17, %v989_v47  ;;  %v1014_v6 = vrot.slane %v996_v50, 4  ;;  %1455 = vmatpush1.bf16.msra.mxu0 %v3499_v54 }
 0x186   :  { %1456 = vmatprep.subr.bf16.mxu0 %v3506_v57 }
 0x187   :  { %2658 = vmatprep.mubr.msk.bf16.mxu0 %vm1022_vm6, %v995_v51  ;;  %v1012_v56 = vrot.slane %v995_v51, 4 }
 0x188   :  { %2659 = vmatmul.mubr.msk.bf16.gmra.mxu0 %vm1022_vm6, %v996_v50 }
 0x189   :  { %v1013_v53 = vsel %vm569_vm4, %v1010_v24, %v1012_v56  ;;  %v1015_v5 = vsel %vm569_vm4, %v1012_v56, %v1014_v6  ;;  %1457 = vmatpush1.bf16.msra.mxu0 %v3511_v58  ;;  %1478 = vmatprep.mubr.bf16.mxu0 %v3051_v15 }
 0x18a   :  { %2638 = vmatprep.mubr.msk.bf16.mxu1 %vm1022_vm6, %v1013_v53  ;;  %1458 = vmatprep.subr.bf16.mxu0 %v3518_v61 }
 0x18b   :  { %2639 = vmatmul.mubr.msk.bf16.gmra.mxu1 %vm1022_vm6, %v1015_v5 }
 0x18c   :  { %2644 = vmatprep.mubr.msk.bf16.mxu1 %vm1022_vm6, %v3453_v62  ;;  %v3523_v62 = vld [vmem:[%s3816_s6 + $0x10] ss:$8 sps:$4 sm:$0xff]  }
 0x18d   :  { %1459 = vmatpush1.bf16.msra.mxu0 %v3523_v62 }
 0x18e   :  { %1460 = vmatprep.subr.bf16.mxu0 %v3530_v4 }
 0x191   :  { %1461 = vmatpush1.bf16.msra.mxu0 %v3535_v9 }
 0x193   :  { %2645 = vmatmul.mubr.msk.bf16.vlgmr.msra.gmra.mxu1 %vm1022_vm6, %v993_v13  ;;  %v2714_v13 = vld [vmem:[#allocation8] ss:$8 sps:$4 sm:$0xff]  }
 0x194   :  { %2648 = vmatprep.mubr.msk.bf16.mxu1 %vm1022_vm6, %v994_v42  ;;  %1354 = vmatpush1.bf16.msra.mxu1 %v2705_v63  ;;  %v2468_v42 = vld [vmem:[#allocation7] ss:$0 sm:$0xff] }
 0x195   :  { %1355 = vmatprep.subr.bf16.mxu1 %v2716_v1  ;;  %1479 = vmatmul.mubr.bf16.vlgmr.msra.gmra.mxu0 %v3051_v15 }
 0x196   :  { %1694 = vmatprep.mubr.bf16.mxu0 %v3051_v15 }
 0x198   :  { %1356 = vmatpush1.bf16.msra.mxu1 %v2714_v13 }
 0x19b   :  { %2649 = vmatmul.mubr.msk.bf16.gmra.mxu1 %vm1022_vm6, %v995_v51 }
 0x19c   :  { %1373 = vmatprep.mubr.bf16.mxu1 %v3051_v15 }
 0x23f   :  { %v2656_v60 = vpop.f32.mrf.mxu0 }
 0x241   :  { %v1229_v36 = vpop.f32.mrf.mxu0 }
 0x242   :  { %v2636_v19 = vpop.f32.mrf.mxu1 }
 0x243   :  { %v2657_v29 = vpop.f32.mrf.mxu0 }
 0x244   :  { %v1069_v21 = vpop.f32.mrf.mxu1 }
 0x245   :  { %v1232_v31 = vpop.f32.mrf.mxu0 }
 0x246   :  { %v2637_v25 = vpop.f32.mrf.mxu1 }
 0x248   :  { %v1072_v10 = vpop.f32.mrf.mxu1  ;;  %v2660_v37 = vpop.f32.mrf.mxu0 }
 0x24a   :  { %v1245_v41 = vpop.f32.mrf.mxu0 }
 0x24b   :  { %v2640_v27 = vpop.f32.mrf.mxu1 }
 0x24c   :  { %v2661_v20 = vpop.f32.mrf.mxu0 }
 0x24d   :  { %v1085_v7 = vpop.f32.mrf.mxu1 }
 0x24e   :  { %v1248_v5 = vpop.f32.mrf.mxu0 }
 0x24f   :  { %v2641_v30 = vpop.f32.mrf.mxu1 }
 0x251   :  { %v1088_v18 = vpop.f32.mrf.mxu1 }
 0x253   :  { %v2646_v33 = vpop.f32.mrf.mxu1 }
 0x254   :  { %v1161_v35 = vadd.f32 %v2646_v33, %v2636_v19 }
 0x255   :  { %v1152_v34 = vpop.f32.mrf.mxu1 }
 0x256   :  { %v1153_v8 = vadd.f32 %v1152_v34, %v1069_v21  ;;  %v1262_v22 = vadd.f32 %v2656_v60, %v1161_v35 }
 0x257   :  { %v2647_v12 = vpop.f32.mrf.mxu1 }
 0x258   :  { %v1164_v55 = vadd.f32 %v2647_v12, %v2637_v25  ;;  %v1260_v38 = vadd.f32 %v1229_v36, %v1153_v8  ;;  %v1277_v44 = vadd.f32 %v2468_v42, %v1262_v22 }
 0x259   :  { %v1155_v14 = vpop.f32.mrf.mxu1 }
 0x25a   :  { %v1263_v39 = vadd.f32 %v2657_v29, %v1164_v55  ;;  %v1156_v40 = vadd.f32 %v1155_v14, %v1072_v10  ;;  %v1275_v49 = vadd.f32 %v2468_v42, %v1260_v38  ;;  %v1480_v10 = vpop.f32.mrf.mxu0  ;;  %v1302_v29 = vld [vmem:[%s3817_s7] sm:$0x3]  ;;  %s3052_s7 = smov 64  }
 0x25b   :  { %v2650_v16 = vpop.f32.mrf.mxu1 }
 0x25c   :  { %v1278_v43 = vadd.f32 %v2468_v42, %v1263_v39  ;;  %v1261_v26 = vadd.f32 %v1232_v31, %v1156_v40  ;;  %v1177_v23 = vadd.f32 %v2650_v16, %v2640_v27  ;;  %v1482_v36 = vpop.f32.mrf.mxu0 }
 0x25d   :  { %v1168_v24 = vpop.f32.mrf.mxu1 }
 0x25e   :  { %v1276_v45 = vadd.f32 %v2468_v42, %v1261_v26  ;;  %v1169_v32 = vadd.f32 %v1168_v24, %v1085_v7  ;;  %v1284_v59 = vmax.f32 %v1277_v44, %v1278_v43  ;;  %v1266_v50 = vadd.f32 %v2660_v37, %v1177_v23  ;;  %v1484_v27 = vpop.f32.mrf.mxu0 }
 0x25f   :  { %v2651_v46 = vpop.f32.mrf.mxu1 }
 0x260   :  { %v1283_v28 = vmax.f32 %v1275_v49, %v1276_v45  ;;  %v1180_v47 = vadd.f32 %v2651_v46, %v2641_v30  ;;  %v1264_v56 = vadd.f32 %v1245_v41, %v1169_v32  ;;  %v1281_v1 = vadd.f32 %v2468_v42, %v1266_v50  ;;  %v1485_v7 = vpop.f32.mrf.mxu0 }
 0x261   :  { %v1171_v17 = vpop.f32.mrf.mxu1  ;;  %v1310_v30 = vsub.s32 1, %v3159_v3  ;;  %v1290_v32 = vand.u32 127, %v147_v0  ;;  %v3583_v0 = vld [vmem:[#allocation10 + $0x34] ss:$8 sps:$4 sm:$0xff]  }
 0x262   :  { %v1287_v51 = vpack.c.bf16 %v1284_v59, %v1283_v28  ;;  %v1267_v6 = vadd.f32 %v2661_v20, %v1180_v47  ;;  %v1172_v53 = vadd.f32 %v1171_v17, %v1088_v18  ;;  %v1279_v13 = vadd.f32 %v2468_v42, %v1264_v56  ;;  %v3576_v17 = vld [vmem:[#allocation11 + $0x34] ss:$8 sps:$4 sm:$0xff]   ;;  %v3580_v56 = vld [vmem:[#allocation11 + $0x24] ss:$8 sps:$4 sm:$0xff]   ;;  %1670 = vmatprep.subr.bf16.mxu0 %v3583_v0 }
 0x263   :  { %v1307_v18 = vrot.slane %v1302_v29, %v3171_v11  ;;  %v3554_v31 = vrot.slane %v1302_v29, %v1310_v30  ;;  %v3570_v20 = vadd.s32 128, %v1290_v32  ;;  %1583 = vmatprep.subr.bf16.mxu1 %v3576_v17 }
 0x264   :  { %v1282_v63 = vadd.f32 %v2468_v42, %v1267_v6  ;;  %v1265_v2 = vadd.f32 %v1248_v5, %v1172_v53  ;;  %2473 = vmatmul.mubr.msk.bf16.vlgmr.msra.gmra.mxu1 %vm1334_vm7, %v1287_v51  ;;  %v3578_v51 = vld [vmem:[#allocation11 + $0x30] ss:$8 sps:$4 sm:$0xff]   ;;  %v3586_v6 = vld [vmem:[#allocation11 + $0x20] ss:$8 sps:$4 sm:$0xff]   ;;  %v3590_v5 = vld [vmem:[#allocation10 + $0x24] ss:$8 sps:$4 sm:$0xff]  }
 0x265   :  { %1383 = vmatprep.mubr.bf16.mxu1 %v3051_v15  ;;  %vm1295_vm8 = vcmp.lt.s32.totalorder %v3570_v20, 192  ;;  %1584 = vmatpush1.bf16.msra.mxu1 %v3578_v51  ;;  %v3588_v53 = vld [vmem:[#allocation10 + $0x30] ss:$8 sps:$4 sm:$0xff]   ;;  %v2746_v20 = vld [vmem:[%s3821_s11 + $0x8] sm:$0xff]  }
 0x266   :  { %v1280_v19 = vadd.f32 %v2468_v42, %v1265_v2  ;;  %v1286_v21 = vmax.f32 %v1281_v1, %v1282_v63  ;;  %1585 = vmatprep.subr.bf16.mxu1 %v3580_v56  ;;  %v3593_v63 = vld [vmem:[#allocation11 + $0x14] ss:$8 sps:$4 sm:$0xff]   ;;  %1671 = vmatpush1.bf16.msra.mxu0 %v3588_v53  ;;  %v3597_v2 = vld [vmem:[#allocation10 + $0x20] ss:$8 sps:$4 sm:$0xff]  }
 0x267   :  { %1672 = vmatprep.subr.bf16.mxu0 %v3590_v5  ;;  %v3600_v1 = vld [vmem:[#allocation10 + $0x14] ss:$8 sps:$4 sm:$0xff]  }
 0x268   :  { %v1285_v25 = vmax.f32 %v1279_v13, %v1280_v19  ;;  %v3603_v13 = vld [vmem:[#allocation11 + $0x10] ss:$8 sps:$4 sm:$0xff]   ;;  %v3606_v19 = vld [vmem:[#allocation11 + $0x4] ss:$8 sps:$4 sm:$0xff]  }
 0x269   :  { %1586 = vmatpush1.bf16.msra.mxu1 %v3586_v6 }
 0x26a   :  { %v1288_v60 = vpack.c.bf16 %v1286_v21, %v1285_v25  ;;  %1587 = vmatprep.subr.bf16.mxu1 %v3593_v63  ;;  %1673 = vmatpush1.bf16.msra.mxu0 %v3597_v2  ;;  %v3609_v21 = vld [vmem:[#allocation10 + $0x10] ss:$8 sps:$4 sm:$0xff]   ;;  %v3612_v25 = vld [vmem:[#allocation10 + $0x4] ss:$8 sps:$4 sm:$0xff]  }
 0x26b   :  { %1674 = vmatprep.subr.bf16.mxu0 %v3600_v1 }
 0x26c   :  { %2474 = vmatmul.mubr.msk.bf16.gmra.mxu1 %vm1334_vm7, %v1288_v60  ;;  %v3615_v60 = vld [vmem:[#allocation11] ss:$8 sps:$4 sm:$0xff]  }
 0x26d   :  { %1607 = vmatprep.mubr.bf16.mxu1 %v3051_v15  ;;  %1588 = vmatpush1.bf16.msra.mxu1 %v3603_v13 }
 0x26e   :  { %1589 = vmatprep.subr.bf16.mxu1 %v3606_v19  ;;  %1675 = vmatpush1.bf16.msra.mxu0 %v3609_v21 }
 0x26f   :  { %1676 = vmatprep.subr.bf16.mxu0 %v3612_v25 }
 0x271   :  { %1590 = vmatpush1.bf16.msra.mxu1 %v3615_v60 }
 0x272   :  { %1750 = vmatprep.subr.bf16.mxu1 %v3494_v52 }
 0x274   :  { %1608 = vmatmul.mubr.bf16.vlgmr.msra.gmra.mxu1 %v3051_v15 }
 0x275   :  { %1751 = vmatpush1.bf16.msra.mxu1 %v3499_v54  ;;  %1774 = vmatprep.mubr.bf16.mxu1 %v3051_v15 }
 0x276   :  { %1752 = vmatprep.subr.bf16.mxu1 %v3506_v57 }
 0x279   :  { %1753 = vmatpush1.bf16.msra.mxu1 %v3511_v58 }
 0x27a   :  { %1754 = vmatprep.subr.bf16.mxu1 %v3518_v61 }
 0x27d   :  { %1755 = vmatpush1.bf16.msra.mxu1 %v3523_v62 }
 0x27e   :  { %1756 = vmatprep.subr.bf16.mxu1 %v3530_v4 }
 0x281   :  { %1757 = vmatpush1.bf16.msra.mxu1 %v3535_v9 }
 0x282   :  { %1873 = vmatprep.subr.bf16.mxu1 %v3583_v0 }
 0x324   :  { %v1375_v33 = vpop.f32.mrf.mxu1 }
 0x325   :  { %v1376_v34 = vadd.f32 %v1375_v33, %v1307_v18 }
 0x326   :  { %v1377_v35 = vpop.f32.mrf.mxu1 }
 0x327   :  { %v1487_v8 = vadd.f32 %v1480_v10, %v1376_v34  ;;  %v1378_v37 = vadd.f32 %v1377_v35, %v3554_v31  ;;  %v3619_v10 = vld [vmem:[#allocation10] ss:$8 sps:$4 sm:$0xff]  }
 0x328   :  { %v1379_v12 = vpop.f32.mrf.mxu1  ;;  %1677 = vmatpush1.bf16.msra.mxu0 %v3619_v10 }
 0x329   :  { %v2483_v55 = vmul.f32 -1.442695, %v1487_v8  ;;  %v1488_v14 = vadd.f32 %v1482_v36, %v1378_v37  ;;  %v3557_v22 = vadd.f32 %v1379_v12, %v1307_v18  ;;  %1826 = vmatprep.subr.bf16.mxu0 %v3576_v17 }
 0x32a   :  { %v1381_v38 = vpop.f32.mrf.mxu1 }
 0x32b   :  { %2748 = vpow2.f32 %v2483_v55  ;;  %v2484_v39 = vmul.f32 -1.442695, %v1488_v14  ;;  %v3560_v40 = vadd.f32 %v1381_v38, %v3554_v31 }
 0x32c   :  { %v1385_v41 = vpop.f32.mrf.mxu1 }
 0x32d   :  { %2750 = vpow2.f32 %v2484_v39  ;;  %v3562_v42 = vadd.f32 %v1385_v41, %v1307_v18 }
 0x32e   :  { %v1387_v16 = vpop.f32.mrf.mxu1  ;;  %2752 = vtanh.f32 %v1488_v14  ;;  %v1703_v14 = vld [vmem:[#allocation13] sm:$0x3] }
 0x32f   :  { %v3565_v43 = vadd.f32 %v1387_v16, %v3554_v31  ;;  %v3663_v38 = vrot.slane %v1703_v14, %v3171_v11 }
 0x330   :  { %v1389_v26 = vpop.f32.mrf.mxu1 }
 0x331   :  { %v3567_v23 = vadd.f32 %v1389_v26, %v1307_v18 }
 0x332   :  { %v3640_v34 = vpop.f32.mrf.mxu1 }
 0x334   :  { %v1609_v35 = vpop.f32.mrf.mxu1 }
 0x336   :  { %v1611_v8 = vpop.f32.mrf.mxu1 }
 0x338   :  { %v2749_v24 = vpop.eup %2748  ;;  %v1613_v37 = vpop.f32.mrf.mxu1 }
 0x339   :  { %v1497_v49 = vadd.f32 1.0, %v2749_v24  ;;  %v3668_v24 = vrot.slane %v1703_v14, %v1310_v30 }
 0x33a   :  { %v2751_v44 = vpop.eup %2750  ;;  %v1614_v12 = vpop.f32.mrf.mxu1 }
 0x33b   :  { %v1498_v45 = vadd.f32 1.0, %v2751_v44  ;;  %v2753_v46 = vpop.eup %2752 }
 0x33d   :  { %2754 = vrcp.f32 %v1498_v45 }
 0x33e   :  { %2756 = vrcp.f32 %v1497_v49 }
 0x34a   :  { %v2755_v59 = vpop.eup %2754 }
 0x34b   :  { %v2757_v28 = vpop.eup %2756  ;;  %v1508_v47 = vsel %vm1295_vm8, %v2753_v46, %v2755_v59 }
 0x34c   :  { %v1510_v50 = vmul.f32 %v2757_v28, %v1508_v47  ;;  %v1509_v36 = vmul.f32 0.0, %v2757_v28 }
 0x34e   :  { %1512 = vrot.lane.b32.xlu0 %v1510_v50, %s3052_s7 }
 0x3c0   :  { %v1513_v27 = vpop.permute.xlu0 %1512 }
 0x3c1   :  { %v3636_v7 = vadd.f32 %v1513_v27, %v1509_v36 }
 0x3c3   :  { %2758 = vtanh.f32 %v3636_v7 }
 0x3d0   :  { %v2759_v29 = vpop.eup %2758 }
 0x3d1   :  { %v1517_v18 = vmul.f32 %v2759_v29, %v1508_v47 }
 0x3d3   :  { %v1518_v33 = vpack.c.bf16 %v1517_v18, %v1517_v18 }
 0x3d5   :  { %1617 = vrot.lane.b32.xlu0 %v1518_v33, %s3052_s7 }
 0x447   :  { %v1618_v55 = vpop.permute.xlu0 %1617 }
 0x448   :  { %2501 = vmatmul.mubr.msk.bf16.vlgmr.msra.gmra.mxu0 %vm1442_vm9, %v1618_v55  ;;  %2504 = vmatmul.mubr.msk.bf16.vlgmr.msra.gmra.mxu1 %vm1442_vm9, %v1618_v55 }
 0x449   :  { %1827 = vmatpush1.bf16.msra.mxu0 %v3578_v51  ;;  %1874 = vmatpush1.bf16.msra.mxu1 %v3588_v53 }
 0x44a   :  { %1828 = vmatprep.subr.bf16.mxu0 %v3580_v56  ;;  %1875 = vmatprep.subr.bf16.mxu1 %v3590_v5 }
 0x44b   :  { %1850 = vmatprep.mubr.bf16.mxu0 %v3051_v15  ;;  %1897 = vmatprep.mubr.bf16.mxu1 %v3051_v15 }
 0x44d   :  { %1829 = vmatpush1.bf16.msra.mxu0 %v3586_v6  ;;  %1876 = vmatpush1.bf16.msra.mxu1 %v3597_v2 }
 0x44e   :  { %1830 = vmatprep.subr.bf16.mxu0 %v3593_v63  ;;  %1877 = vmatprep.subr.bf16.mxu1 %v3600_v1 }
 0x451   :  { %1831 = vmatpush1.bf16.msra.mxu0 %v3603_v13  ;;  %1878 = vmatpush1.bf16.msra.mxu1 %v3609_v21 }
 0x452   :  { %1832 = vmatprep.subr.bf16.mxu0 %v3606_v19  ;;  %1879 = vmatprep.subr.bf16.mxu1 %v3612_v25 }
 0x455   :  { %1833 = vmatpush1.bf16.msra.mxu0 %v3615_v60  ;;  %1880 = vmatpush1.bf16.msra.mxu1 %v3619_v10 }
 0x456   :  { %1941 = vmatprep.subr.bf16.mxu0 %v3494_v52  ;;  %2017 = vmatprep.subr.bf16.mxu1 %v3576_v17 }
 0x508   :  { %v1696_v39 = vpop.f32.mrf.mxu0  ;;  %v1776_v41 = vpop.f32.mrf.mxu1 }
 0x509   :  { %v1697_v16 = vadd.f32 %v1696_v39, %v1609_v35  ;;  %v1783_v26 = vadd.f32 %v1776_v41, %v3557_v22 }
 0x50a   :  { %v1698_v44 = vpop.f32.mrf.mxu0  ;;  %v1778_v49 = vpop.f32.mrf.mxu1 }
 0x50b   :  { %v1715_v45 = vadd.f32 %v3663_v38, %v1697_v16  ;;  %v1699_v32 = vadd.f32 %v1698_v44, %v1611_v8  ;;  %v1784_v46 = vadd.f32 %v1778_v49, %v3560_v40  ;;  %v2505_v59 = vmul.f32 -1.442695, %v1783_v26 }
 0x50c   :  { %v1700_v28 = vpop.f32.mrf.mxu0  ;;  %v1780_v11 = vpop.f32.mrf.mxu1 }
 0x50d   :  { %v2502_v47 = vmul.f32 -1.442695, %v1715_v45  ;;  %v1716_v50 = vadd.f32 %v3668_v24, %v1699_v32  ;;  %v2506_v36 = vmul.f32 -1.442695, %v1784_v46 }
 0x50e   :  { %v1701_v27 = vpop.f32.mrf.mxu0  ;;  %v1781_v22 = vpop.f32.mrf.mxu1 }
 0x50f   :  { %2760 = vpow2.f32 %v2502_v47  ;;  %v2503_v3 = vmul.f32 -1.442695, %v1716_v50 }
 0x510   :  { %2762 = vpow2.f32 %v2505_v59 }
 0x511   :  { %2764 = vpow2.f32 %v2503_v3 }
 0x512   :  { %2766 = vpow2.f32 %v2506_v36 }
 0x513   :  { %2768 = vtanh.f32 %v1716_v50 }
 0x51c   :  { %v2761_v30 = vpop.eup %2760 }
 0x51d   :  { %v2763_v29 = vpop.eup %2762  ;;  %v1725_v18 = vadd.f32 1.0, %v2761_v30 }
 0x51e   :  { %v2765_v33 = vpop.eup %2764  ;;  %v1793_v37 = vadd.f32 1.0, %v2763_v29 }
 0x51f   :  { %v2767_v35 = vpop.eup %2766  ;;  %v1726_v40 = vadd.f32 1.0, %v2765_v33  ;;  %2770 = vrcp.f32 %v1725_v18 }
 0x520   :  { %v1794_v8 = vadd.f32 1.0, %v2767_v35  ;;  %v2769_v12 = vpop.eup %2768 }
 0x521   :  { %2772 = vrcp.f32 %v1726_v40 }
 0x522   :  { %2774 = vrcp.f32 %v1794_v8 }
 0x523   :  { %2776 = vtanh.f32 %v1784_v46 }
 0x524   :  { %2778 = vrcp.f32 %v1793_v37 }
 0x52c   :  { %v2771_v55 = vpop.eup %2770 }
 0x52d   :  { %v1733_v32 = vmul.f32 0.0, %v2771_v55 }
 0x52e   :  { %v2773_v14 = vpop.eup %2772 }
 0x52f   :  { %v2775_v39 = vpop.eup %2774  ;;  %v1732_v41 = vsel %vm1295_vm8, %v2769_v12, %v2773_v14 }
 0x530   :  { %v2777_v16 = vpop.eup %2776  ;;  %v1734_v26 = vmul.f32 %v2771_v55, %v1732_v41 }
 0x531   :  { %v1800_v44 = vsel %vm1295_vm8, %v2777_v16, %v2775_v39  ;;  %v2779_v49 = vpop.eup %2778 }
 0x532   :  { %1736 = vrot.lane.b32.xlu1 %v1734_v26, %s3052_s7  ;;  %v1802_v45 = vmul.f32 %v2779_v49, %v1800_v44  ;;  %v1801_v28 = vmul.f32 %v2779_v49, %v3636_v7 }
 0x536   :  { %1804 = vrot.lane.b32.xlu1 %v1802_v45, %s3052_s7 }
 0x5a4   :  { %v1737_v46 = vpop.permute.xlu1 %1736 }
 0x5a5   :  { %v3679_v59 = vadd.f32 %v1737_v46, %v1733_v32 }
 0x5a7   :  { %2780 = vtanh.f32 %v3679_v59 }
 0x5a8   :  { %v1805_v11 = vpop.permute.xlu1 %1804 }
 0x5a9   :  { %v3683_v47 = vadd.f32 %v1805_v11, %v1801_v28 }
 0x5ab   :  { %2782 = vtanh.f32 %v3683_v47 }
 0x5b4   :  { %v2781_v50 = vpop.eup %2780 }
 0x5b5   :  { %v1741_v36 = vmul.f32 %v2781_v50, %v1732_v41 }
 0x5b7   :  { %v1811_v27 = vpack.c.bf16 %v1741_v36, %v1741_v36 }
 0x5b8   :  { %v2783_v22 = vpop.eup %2782 }
 0x5b9   :  { %1813 = vrot.lane.b32.xlu0 %v1811_v27, %s3052_s7  ;;  %v1809_v3 = vmul.f32 %v2783_v22, %v1800_v44 }
 0x5bb   :  { %v1810_v30 = vpack.c.bf16 %v1809_v3, %v1809_v3 }
 0x5bd   :  { %1860 = vrot.lane.b32.xlu1 %v1810_v30, %s3052_s7 }
 0x62b   :  { %v1814_v29 = vpop.permute.xlu0 %1813 }
 0x62c   :  { %2507 = vmatmul.mubr.msk.bf16.vlgmr.msra.gmra.mxu0 %vm1442_vm9, %v1814_v29 }
 0x62d   :  { %1942 = vmatpush1.bf16.msra.mxu0 %v3499_v54  ;;  %1965 = vmatprep.mubr.bf16.mxu0 %v3051_v15 }
 0x62e   :  { %1943 = vmatprep.subr.bf16.mxu0 %v3506_v57 }
 0x62f   :  { %v1861_v7 = vpop.permute.xlu1 %1860 }
 0x630   :  { %2508 = vmatmul.mubr.msk.bf16.vlgmr.msra.gmra.mxu1 %vm1442_vm9, %v1861_v7 }
 0x631   :  { %1944 = vmatpush1.bf16.msra.mxu0 %v3511_v58  ;;  %2018 = vmatpush1.bf16.msra.mxu1 %v3578_v51 }
 0x632   :  { %1945 = vmatprep.subr.bf16.mxu0 %v3518_v61  ;;  %2019 = vmatprep.subr.bf16.mxu1 %v3580_v56 }
 0x633   :  { %2041 = vmatprep.mubr.bf16.mxu1 %v3051_v15 }
 0x635   :  { %1946 = vmatpush1.bf16.msra.mxu0 %v3523_v62  ;;  %2020 = vmatpush1.bf16.msra.mxu1 %v3586_v6 }
 0x636   :  { %1947 = vmatprep.subr.bf16.mxu0 %v3530_v4  ;;  %2021 = vmatprep.subr.bf16.mxu1 %v3593_v63 }
 0x639   :  { %1948 = vmatpush1.bf16.msra.mxu0 %v3535_v9  ;;  %2022 = vmatpush1.bf16.msra.mxu1 %v3603_v13 }
 0x63a   :  { %2064 = vmatprep.subr.bf16.mxu0 %v3583_v0  ;;  %2023 = vmatprep.subr.bf16.mxu1 %v3606_v19 }
 0x63c   :  { %2511 = vmatmul.mubr.msk.bf16.vlgmr.msra.gmra.mxu0 %vm1442_vm9, %v1861_v7 }
 0x63d   :  { %2065 = vmatpush1.bf16.msra.mxu0 %v3588_v53  ;;  %2024 = vmatpush1.bf16.msra.mxu1 %v3615_v60 }
 0x63e   :  { %2066 = vmatprep.subr.bf16.mxu0 %v3590_v5  ;;  %2132 = vmatprep.subr.bf16.mxu1 %v3494_v52 }
 0x63f   :  { %2088 = vmatprep.mubr.bf16.mxu0 %v3051_v15 }
 0x641   :  { %2067 = vmatpush1.bf16.msra.mxu0 %v3597_v2 }
 0x642   :  { %2068 = vmatprep.subr.bf16.mxu0 %v3600_v1 }
 0x645   :  { %2069 = vmatpush1.bf16.msra.mxu0 %v3609_v21 }
 0x646   :  { %2070 = vmatprep.subr.bf16.mxu0 %v3612_v25 }
 0x649   :  { %2071 = vmatpush1.bf16.msra.mxu0 %v3619_v10 }
 0x64a   :  { %2208 = vmatprep.subr.bf16.mxu0 %v3576_v17 }
 0x6ec   :  { %v1852_v18 = vpop.f32.mrf.mxu0 }
 0x6ee   :  { %v1854_v33 = vpop.f32.mrf.mxu0 }
 0x6f0   :  { %v1856_v35 = vpop.f32.mrf.mxu0  ;;  %v1899_v40 = vpop.f32.mrf.mxu1 }
 0x6f1   :  { %v1900_v8 = vadd.f32 %v1899_v40, %v1852_v18 }
 0x6f2   :  { %v1857_v52 = vpop.f32.mrf.mxu0  ;;  %v1901_v37 = vpop.f32.mrf.mxu1 }
 0x6f3   :  { %v1906_v12 = vadd.f32 %v1900_v8, %v3663_v38  ;;  %v1902_v55 = vadd.f32 %v1901_v37, %v1854_v33 }
 0x6f4   :  { %v1903_v14 = vpop.f32.mrf.mxu1 }
 0x6f5   :  { %v2509_v39 = vmul.f32 -1.442695, %v1906_v12  ;;  %v1907_v41 = vadd.f32 %v1902_v55, %v3668_v24 }
 0x6f6   :  { %v1904_v16 = vpop.f32.mrf.mxu1 }
 0x6f7   :  { %2784 = vpow2.f32 %v2509_v39  ;;  %v2510_v26 = vmul.f32 -1.442695, %v1907_v41 }
 0x6f9   :  { %2786 = vpow2.f32 %v2510_v26 }
 0x6fc   :  { %v1967_v44 = vpop.f32.mrf.mxu0 }
 0x6fd   :  { %v1974_v17 = vadd.f32 %v1967_v44, %v3562_v42 }
 0x6fe   :  { %v1969_v49 = vpop.f32.mrf.mxu0 }
 0x6ff   :  { %v2512_v45 = vmul.f32 -1.442695, %v1974_v17  ;;  %v1975_v32 = vadd.f32 %v1969_v49, %v3565_v43 }
 0x700   :  { %v1971_v46 = vpop.f32.mrf.mxu0 }
 0x701   :  { %2788 = vpow2.f32 %v2512_v45  ;;  %v2513_v28 = vmul.f32 -1.442695, %v1975_v32 }
 0x702   :  { %v1972_v11 = vpop.f32.mrf.mxu0 }
 0x703   :  { %2790 = vpow2.f32 %v2513_v28 }
 0x704   :  { %v2785_v50 = vpop.eup %2784  ;;  %2792 = vtanh.f32 %v1907_v41 }
 0x705   :  { %v1916_v27 = vadd.f32 1.0, %v2785_v50 }
 0x706   :  { %v2787_v36 = vpop.eup %2786 }
 0x707   :  { %v1917_v22 = vadd.f32 1.0, %v2787_v36 }
 0x709   :  { %2794 = vrcp.f32 %v1917_v22 }
 0x70a   :  { %2796 = vrcp.f32 %v1916_v27 }
 0x70b   :  { %2798 = vtanh.f32 %v1975_v32 }
 0x70e   :  { %v2789_v3 = vpop.eup %2788 }
 0x70f   :  { %v1984_v29 = vadd.f32 1.0, %v2789_v3 }
 0x710   :  { %v2791_v30 = vpop.eup %2790 }
 0x711   :  { %v1985_v42 = vadd.f32 1.0, %v2791_v30  ;;  %v2793_v43 = vpop.eup %2792 }
 0x713   :  { %2800 = vrcp.f32 %v1985_v42 }
 0x714   :  { %2802 = vrcp.f32 %v1984_v29 }
 0x716   :  { %v2795_v7 = vpop.eup %2794 }
 0x717   :  { %v2797_v18 = vpop.eup %2796  ;;  %v1923_v33 = vsel %vm1295_vm8, %v2793_v43, %v2795_v7 }
 0x718   :  { %v1925_v35 = vmul.f32 %v2797_v18, %v1923_v33  ;;  %v2799_v40 = vpop.eup %2798  ;;  %v1924_v55 = vmul.f32 %v2797_v18, %v3679_v59 }
 0x71a   :  { %1927 = vrot.lane.b32.xlu0 %v1925_v35, %s3052_s7 }
 0x720   :  { %v2801_v8 = vpop.eup %2800 }
 0x721   :  { %v2803_v52 = vpop.eup %2802  ;;  %v1991_v37 = vsel %vm1295_vm8, %v2799_v40, %v2801_v8 }
 0x722   :  { %v1993_v12 = vmul.f32 %v2803_v52, %v1991_v37  ;;  %v1992_v41 = vmul.f32 %v2803_v52, %v3683_v47 }
 0x724   :  { %1995 = vrot.lane.b32.xlu1 %v1993_v12, %s3052_s7 }
 0x78c   :  { %v1928_v14 = vpop.permute.xlu0 %1927 }
 0x78d   :  { %v3729_v39 = vadd.f32 %v1928_v14, %v1924_v55 }
 0x78f   :  { %2804 = vtanh.f32 %v3729_v39 }
 0x796   :  { %v1996_v16 = vpop.permute.xlu1 %1995 }
 0x797   :  { %v3733_v26 = vadd.f32 %v1996_v16, %v1992_v41 }
 0x799   :  { %2806 = vtanh.f32 %v3733_v26 }
 0x79c   :  { %v2805_v44 = vpop.eup %2804 }
 0x79d   :  { %v1932_v17 = vmul.f32 %v2805_v44, %v1923_v33 }
 0x79f   :  { %v2002_v49 = vpack.c.bf16 %v1932_v17, %v1932_v17 }
 0x7a1   :  { %2004 = vrot.lane.b32.xlu0 %v2002_v49, %s3052_s7 }
 0x7a6   :  { %v2807_v45 = vpop.eup %2806 }
 0x7a7   :  { %v2000_v32 = vmul.f32 %v2807_v45, %v1991_v37 }
 0x7a9   :  { %v2001_v59 = vpack.c.bf16 %v2000_v32, %v2000_v32 }
 0x7ab   :  { %2051 = vrot.lane.b32.xlu1 %v2001_v59, %s3052_s7 }
 0x813   :  { %v2005_v46 = vpop.permute.xlu0 %2004 }
 0x814   :  { %2514 = vmatmul.mubr.msk.bf16.vlgmr.msra.gmra.mxu1 %vm1442_vm9, %v2005_v46 }
 0x815   :  { %2133 = vmatpush1.bf16.msra.mxu1 %v3499_v54  ;;  %2156 = vmatprep.mubr.bf16.mxu1 %v3051_v15 }
 0x816   :  { %2134 = vmatprep.subr.bf16.mxu1 %v3506_v57 }
 0x819   :  { %2135 = vmatpush1.bf16.msra.mxu1 %v3511_v58 }
 0x81a   :  { %2136 = vmatprep.subr.bf16.mxu1 %v3518_v61 }
 0x81d   :  { %2137 = vmatpush1.bf16.msra.mxu1 %v3523_v62  ;;  %v2052_v47 = vpop.permute.xlu1 %2051 }
 0x81e   :  { %2515 = vmatmul.mubr.msk.bf16.vlgmr.msra.gmra.mxu0 %vm1442_vm9, %v2052_v47  ;;  %2138 = vmatprep.subr.bf16.mxu1 %v3530_v4 }
 0x81f   :  { %2209 = vmatpush1.bf16.msra.mxu0 %v3578_v51  ;;  %2232 = vmatprep.mubr.bf16.mxu0 %v3051_v15 }
 0x820   :  { %2210 = vmatprep.subr.bf16.mxu0 %v3580_v56 }
 0x821   :  { %2139 = vmatpush1.bf16.msra.mxu1 %v3535_v9 }
 0x822   :  { %2255 = vmatprep.subr.bf16.mxu1 %v3583_v0 }
 0x823   :  { %2211 = vmatpush1.bf16.msra.mxu0 %v3586_v6 }
 0x824   :  { %2518 = vmatmul.mubr.msk.bf16.vlgmr.msra.gmra.mxu1 %vm1442_vm9, %v2052_v47  ;;  %2212 = vmatprep.subr.bf16.mxu0 %v3593_v63  ;;  %v1392_v63 = vadd.f32 %v3640_v34, %v3554_v31 }
 0x825   :  { %2256 = vmatpush1.bf16.msra.mxu1 %v3588_v53  ;;  %2279 = vmatprep.mubr.bf16.mxu1 %v3051_v15 }
 0x826   :  { %2257 = vmatprep.subr.bf16.mxu1 %v3590_v5 }
 0x827   :  { %2213 = vmatpush1.bf16.msra.mxu0 %v3603_v13 }
 0x828   :  { %2214 = vmatprep.subr.bf16.mxu0 %v3606_v19 }
 0x829   :  { %2258 = vmatpush1.bf16.msra.mxu1 %v3597_v2 }
 0x82a   :  { %2259 = vmatprep.subr.bf16.mxu1 %v3600_v1 }
 0x82b   :  { %2215 = vmatpush1.bf16.msra.mxu0 %v3615_v60 }
 0x82c   :  { %2662 = vmatprep.subr.bf16.mxu0 %v3050_v48 }
 0x82d   :  { %2260 = vmatpush1.bf16.msra.mxu1 %v3609_v21 }
 0x82e   :  { %2261 = vmatprep.subr.bf16.mxu1 %v3612_v25 }
 0x831   :  { %2262 = vmatpush1.bf16.msra.mxu1 %v3619_v10 }
 0x8d4   :  { %v2043_v54 = vpop.f32.mrf.mxu1 }
 0x8d6   :  { %v2045_v57 = vpop.f32.mrf.mxu1 }
 0x8d8   :  { %v2047_v58 = vpop.f32.mrf.mxu1 }
 0x8da   :  { %v2048_v61 = vpop.f32.mrf.mxu1 }
 0x8de   :  { %v2090_v62 = vpop.f32.mrf.mxu0 }
 0x8df   :  { %v2091_v4 = vadd.f32 %v2090_v62, %v2043_v54 }
 0x8e0   :  { %v2092_v9 = vpop.f32.mrf.mxu0 }
 0x8e1   :  { %v2097_v15 = vadd.f32 %v2091_v4, %v3663_v38  ;;  %v2093_v51 = vadd.f32 %v2092_v9, %v2045_v57 }
 0x8e2   :  { %v2094_v56 = vpop.f32.mrf.mxu0 }
 0x8e3   :  { %v2516_v0 = vmul.f32 -1.442695, %v2097_v15  ;;  %v2098_v6 = vadd.f32 %v2093_v51, %v3668_v24 }
 0x8e4   :  { %v2095_v53 = vpop.f32.mrf.mxu0  ;;  %v2158_v5 = vpop.f32.mrf.mxu1 }
 0x8e5   :  { %2808 = vpow2.f32 %v2516_v0  ;;  %v2517_v2 = vmul.f32 -1.442695, %v2098_v6  ;;  %v2165_v1 = vadd.f32 %v2158_v5, %v3567_v23 }
 0x8e6   :  { %v2160_v13 = vpop.f32.mrf.mxu1 }
 0x8e7   :  { %2810 = vpow2.f32 %v2517_v2  ;;  %v2519_v19 = vmul.f32 -1.442695, %v2165_v1  ;;  %v2166_v21 = vadd.f32 %v2160_v13, %v1392_v63  ;;  %v2745_v13 = vld [vmem:[%s3821_s11 + $0x10] sm:$0xff]  }
 0x8e8   :  { %v2162_v25 = vpop.f32.mrf.mxu1 }
 0x8e9   :  { %2812 = vpow2.f32 %v2519_v19  ;;  %v2520_v60 = vmul.f32 -1.442695, %v2166_v21  ;;  %v2747_v19 = vld [vmem:[%s3821_s11] sm:$0xff]  }
 0x8ea   :  { %v2163_v10 = vpop.f32.mrf.mxu1 }
 0x8eb   :  { %2814 = vpow2.f32 %v2520_v60 }
 0x8ec   :  { %2816 = vtanh.f32 %v2098_v6 }
 0x8f2   :  { %v2809_v28 = vpop.eup %2808 }
 0x8f3   :  { %v2107_v50 = vadd.f32 1.0, %v2809_v28 }
 0x8f4   :  { %v2811_v11 = vpop.eup %2810 }
 0x8f5   :  { %v2108_v36 = vadd.f32 1.0, %v2811_v11 }
 0x8f6   :  { %v2813_v27 = vpop.eup %2812 }
 0x8f7   :  { %2818 = vrcp.f32 %v2108_v36  ;;  %v2175_v34 = vadd.f32 1.0, %v2813_v27  ;;  %v2525_v36 = vld [vmem:[#allocation14] ss:$0 sm:$0xff] }
 0x8f8   :  { %v2815_v31 = vpop.eup %2814  ;;  %2820 = vrcp.f32 %v2107_v50 }
 0x8f9   :  { %v2176_v23 = vadd.f32 1.0, %v2815_v31  ;;  %2822 = vtanh.f32 %v2166_v21  ;;  %v2817_v22 = vpop.eup %2816 }
 0x8fb   :  { %2824 = vrcp.f32 %v2176_v23 }
 0x8fc   :  { %2826 = vrcp.f32 %v2175_v34 }
 0x904   :  { %v2819_v3 = vpop.eup %2818 }
 0x905   :  { %v2821_v30 = vpop.eup %2820  ;;  %v2114_v29 = vsel %vm1295_vm8, %v2817_v22, %v2819_v3 }
 0x906   :  { %v2116_v42 = vmul.f32 %v2821_v30, %v2114_v29  ;;  %v2823_v43 = vpop.eup %2822  ;;  %v2115_v40 = vmul.f32 %v2821_v30, %v3729_v39 }
 0x908   :  { %v2825_v7 = vpop.eup %2824  ;;  %2118 = vrot.lane.b32.xlu0 %v2116_v42, %s3052_s7 }
 0x909   :  { %v2827_v18 = vpop.eup %2826  ;;  %v2182_v33 = vsel %vm1295_vm8, %v2823_v43, %v2825_v7 }
 0x90a   :  { %v2184_v35 = vmul.f32 %v2827_v18, %v2182_v33  ;;  %v2183_v37 = vmul.f32 %v2827_v18, %v3733_v26 }
 0x90c   :  { %2186 = vrot.lane.b32.xlu1 %v2184_v35, %s3052_s7 }
 0x97a   :  { %v2119_v8 = vpop.permute.xlu0 %2118 }
 0x97b   :  { %v2121_v52 = vadd.f32 %v2119_v8, %v2115_v40 }
 0x97d   :  { %2828 = vtanh.f32 %v2121_v52 }
 0x97e   :  { %v2187_v12 = vpop.permute.xlu1 %2186 }
 0x97f   :  { %v2189_v55 = vadd.f32 %v2187_v12, %v2183_v37 }
 0x981   :  { %2830 = vtanh.f32 %v2189_v55 }
 0x98a   :  { %v2829_v14 = vpop.eup %2828 }
 0x98b   :  { %v2123_v41 = vmul.f32 %v2829_v14, %v2114_v29 }
 0x98d   :  { %v2193_v16 = vpack.c.bf16 %v2123_v41, %v2123_v41 }
 0x98e   :  { %v2831_v44 = vpop.eup %2830 }
 0x98f   :  { %2195 = vrot.lane.b32.xlu0 %v2193_v16, %s3052_s7  ;;  %v2191_v17 = vmul.f32 %v2831_v44, %v2182_v33 }
 0x991   :  { %v2192_v49 = vpack.c.bf16 %v2191_v17, %v2191_v17 }
 0x993   :  { %2242 = vrot.lane.b32.xlu1 %v2192_v49, %s3052_s7 }
 0xa01   :  { %v2196_v45 = vpop.permute.xlu0 %2195 }
 0xa02   :  { %2521 = vmatmul.mubr.msk.bf16.vlgmr.msra.gmra.mxu0 %vm1442_vm9, %v2196_v45 }
 0xa03   :  { %2670 = vmatprep.mubr.msk.bf16.mxu0 %vm3053_vm10, %v3050_v48 }
 0xa05   :  { %v2243_v39 = vpop.permute.xlu1 %2242 }
 0xa06   :  { %2522 = vmatmul.mubr.msk.bf16.vlgmr.msra.gmra.mxu1 %vm1442_vm9, %v2243_v39 }
 0xac2   :  { %v2234_v26 = vpop.f32.mrf.mxu0 }
 0xac4   :  { %v2236_v32 = vpop.f32.mrf.mxu0 }
 0xac6   :  { %v2238_v59 = vpop.f32.mrf.mxu0  ;;  %v2281_v46 = vpop.f32.mrf.mxu1 }
 0xac7   :  { %v2282_v47 = vadd.f32 %v2281_v46, %v2234_v26 }
 0xac8   :  { %v2239_v54 = vpop.f32.mrf.mxu0  ;;  %v2283_v57 = vpop.f32.mrf.mxu1 }
 0xac9   :  { %v2288_v58 = vadd.f32 %v2282_v47, %v3663_v38  ;;  %v2284_v61 = vadd.f32 %v2283_v57, %v2236_v32 }
 0xaca   :  { %v2285_v62 = vpop.f32.mrf.mxu1 }
 0xacb   :  { %v2523_v4 = vmul.f32 -1.442695, %v2288_v58  ;;  %v2289_v9 = vadd.f32 %v2284_v61, %v3668_v24  ;;  %v2744_v24 = vld [vmem:[%s3821_s11 + $0x18] sm:$0xff]   ;;  %s3004_s11 = scalar_lea.vmem %s2410_s1, 32 }
 0xacc   :  { %v2286_v15 = vpop.f32.mrf.mxu1  ;;  %2663 = vmatpush3.bf16.msra.mxu0 %v2744_v24  ;;  %p3005_p12 = scmp.ne.s32.totalorder %s2410_s1, %s3004_s11  ;;  %p3010_p0 = scmp.lt.s32.totalorder %s3004_s11, %s3004_s11 }
 0xacd   :  { %2832 = vpow2.f32 %v2523_v4  ;;  %v2524_v51 = vmul.f32 -1.442695, %v2289_v9  ;;  %2664 = vmatprep.subr.bf16.mxu0 %v3050_v48 }
 0xace   :  { %p3011_p1 = por %p3010_p0, %p3009_p13 }
 0xacf   :  { %2834 = vpow2.f32 %v2524_v51 }
 0xad0   :  { %2836 = vtanh.f32 %v2289_v9  ;;  %2665 = vmatpush3.bf16.msra.mxu0 %v2745_v13  ;;  %p3012_p2 = pnand %p3011_p1, %p3005_p12 }
 0xad1   :  { %2666 = vmatprep.subr.bf16.mxu0 %v3050_v48 }
 0xad4   :  { %2667 = vmatpush3.bf16.msra.mxu0 %v2746_v20 }
 0xad5   :  { %2668 = vmatprep.subr.bf16.mxu0 %v3050_v48 }
 0xad8   :  { %2669 = vmatpush3.bf16.msra.mxu0 %v2747_v19 }
 0xada   :  { %v2833_v56 = vpop.eup %2832 }
 0xadb   :  { %v2298_v6 = vadd.f32 1.0, %v2833_v56 }
 0xadc   :  { %v2835_v0 = vpop.eup %2834 }
 0xadd   :  { %v2299_v53 = vadd.f32 1.0, %v2835_v0  ;;  %v2837_v5 = vpop.eup %2836 }
 0xadf   :  { %2838 = vrcp.f32 %v2299_v53 }
 0xae0   :  { %2840 = vrcp.f32 %v2298_v6 }
 0xaec   :  { %v2839_v63 = vpop.eup %2838 }
 0xaed   :  { %v2841_v2 = vpop.eup %2840  ;;  %v2305_v38 = vsel %vm1295_vm8, %v2837_v5, %v2839_v63 }
 0xaee   :  { %v2307_v1 = vmul.f32 %v2841_v2, %v2305_v38  ;;  %v2306_v21 = vmul.f32 %v2841_v2, %v2121_v52 }
 0xaf0   :  { %2309 = vrot.lane.b32.xlu0 %v2307_v1, %s3052_s7 }
 0xb62   :  { %v2310_v25 = vpop.permute.xlu0 %2309 }
 0xb63   :  { %v2312_v60 = vadd.f32 %v2310_v25, %v2306_v21 }
 0xb65   :  { %2842 = vtanh.f32 %v2312_v60 }
 0xb72   :  { %v2843_v10 = vpop.eup %2842 }
 0xb73   :  { %v2314_v28 = vmul.f32 %v2843_v10, %v2305_v38 }
 0xb75   :  { %v2315_v11 = vpack.c.bf16 %v2314_v28, %v2314_v28 }
 0xb77   :  { %2332 = vrot.lane.b32.xlu1 %v2315_v11, %s3052_s7 }
 0xbe9   :  { %v2333_v50 = vpop.permute.xlu1 %2332 }
 0xbea   :  { %2671 = vmatmul.mubr.msk.bf16.vlgmr.msra.gmra.mxu0 %vm1442_vm9, %v2333_v50 }
 0xcaa   :  { %v2395_v27 = vpop.f32.mrf.mxu0 }
 0xcab   :  { %v2396_v31 = vadd.f32 %v2525_v36, %v2395_v27 }
 0xcac   :  { %v2672_v48 = vpop.f32.mrf.mxu0 }
 0xcad   :  { %2402 = vst.msk [vmem:[#allocation16] sm:$0x3] %vm2401_vm11, %v2396_v31 }
 0xcae   :  { %v2398_v34 = vpop.f32.mrf.mxu0 }
 0xcaf   :  { %3015 = shalt.err (!%p3012_p2)
}
 0xcb0   :  { %2412 = dma.vmem_to_hbm [thread:$0]  %s2410_s1, 32, %s3823_s13, [#allocation4]   ;;  %v2673_v23 = vpop.f32.mrf.mxu0 }
 0xcb1   :  { %3034 = dma.done.wait [#allocation4], 32  }
 0xcb2   :  { %3035 = vsyncadd [#allocation4], 4294967264 }
 0xcb3   :  { %2416 = vsyncpa [#allocation3], 1 }
 0xcb4   :  { %2417 = vsyncpa [#allocation6], 1 }
 0xcb5   :  { %2418 = vsyncpa [#allocation9], 1 }
 0xcb6   :  { %2419 = vsyncpa [#allocation12], 1 }
 0xcb7   :  { %2420 = vsyncpa [#allocation15], 1 }
 0xcb8   :  { %2421 = vsyncpa [#allocation4], 1 }

</bundles_post_ra>
